<compile_context>
chip_gen: v7x
topology: tpu7x:2x2x1
jax: 0.10.0
libtpu: 0.0.40
codegen_flags: <defaults>
</compile_context>

<pallas_src>
import functools

import jax
import jax.numpy as jnp
from jax.experimental import pallas as pl
from jax.experimental.pallas import tpu as pltpu

BN_EPS = 1e-5
# Keep the dense adjacency VMEM-resident while its bf16 footprint is at most
# this many bytes (Np <= 2048); above that, stream it in column tiles.
A_RESIDENT_BYTES = 8 << 20


def _round_up(v, m):
    return ((v + m - 1) // m) * m


def _pad2(a, rows, cols):
    return jnp.pad(a, ((0, rows - a.shape[0]), (0, cols - a.shape[1])))


def _bspec(block_shape, index_map, *, single_buffer=False):
    """BlockSpec, optionally single-buffered (for constant-index_map blocks)."""
    if single_buffer and hasattr(pl, "Buffered"):
        try:
            return pl.BlockSpec(block_shape, index_map,
                                pipeline_mode=pl.Buffered(1))
        except TypeError:   # older BlockSpec signature: fall back to default
            pass
    return pl.BlockSpec(block_shape, index_map)


# ---------------------------------------------------------------------------
# Fused Pallas kernel: all layers + pooling in one call.
# grid = (L, KT); axis 0 = layer (h carries), axis 1 = A column tile.
# ---------------------------------------------------------------------------
def _gin_fused_kernel(x_hbm_ref, a_ref, eagg_ref, w1_ref, b1_ref, w2_ref,
                      b2_ref, gamma_ref, beta_ref, p_ref,
                      node_out_ref, graph_out_ref,
                      h_ref, agg_ref, mask_ref, *, n_real, inv_n, tk):
    l = pl.program_id(0)
    k = pl.program_id(1)
    last_l = pl.num_programs(0) - 1
    last_k = pl.num_programs(1) - 1

    @pl.when((l == 0) & (k == 0))
    def _init():
        # x only seeds h: keep it in HBM and DMA it once instead of holding
        # an [Np, Dp] f32 block in VMEM for the whole kernel.
        pltpu.sync_copy(x_hbm_ref, h_ref)
        # Row-validity mask ([Np, 1], broadcasts over features), built once.
        row = jax.lax.broadcasted_iota(jnp.int32, mask_ref.shape, 0)
        mask_ref[...] = (row < n_real).astype(jnp.float32)

    # GINConv (aggr='add', eps=0, message = x_j + edge_emb):
    #   out_i = mlp( sum_j h_j + sum_j e_ji + (1+eps) * h_i )
    #         = mlp( A @ h + eagg + h )
    # Seeding the accumulator with h folds the "(1+eps)*x" term in for free.
    @pl.when(k == 0)
    def _seed():
        agg_ref[...] = h_ref[...]

    # Streamed partial aggregation over source-node column tiles of A.
    k0 = pl.multiple_of(k * tk, tk)
    h_tile = h_ref[pl.ds(k0, tk), :]
    agg_ref[...] += jnp.dot(a_ref[...], h_tile.astype(jnp.bfloat16),
                            preferred_element_type=jnp.float32)

    @pl.when(k == last_k)
    def _layer_epilogue():
        z = agg_ref[...] + eagg_ref[...].astype(jnp.float32)

        # mlp = Linear(D, 2D) -> ReLU -> Linear(2D, D); bf16 MXU, f32 accum.
        z = jnp.dot(z.astype(jnp.bfloat16), w1_ref[...],
                    preferred_element_type=jnp.float32) + b1_ref[...]
        z = jnp.maximum(z, 0.0)
        z = jnp.dot(z.astype(jnp.bfloat16), w2_ref[...],
                    preferred_element_type=jnp.float32) + b2_ref[...]

        # Zero padded node rows once so the single-pass BatchNorm statistics
        # below need no further masking (training-mode biased batch stats).
        z = z * mask_ref[...]
        s1 = jnp.sum(z, axis=0, keepdims=True)
        s2 = jnp.sum(z * z, axis=0, keepdims=True)
        mean = s1 * inv_n
        var = jnp.maximum(s2 * inv_n - mean * mean, 0.0)
        scale = gamma_ref[...] * jax.lax.rsqrt(var + BN_EPS)
        shift = beta_ref[...] - mean * scale
        h_ref[...] = jnp.maximum(z * scale + shift, 0.0)   # BN affine + F.relu

    @pl.when((k == last_k) & (l == last_l))
    def _final_epilogue():
        z = h_ref[...]
        node_out_ref[...] = z                      # padded rows sliced off outside
        # global_mean_pool folded into the epilogue: P[g, i] = 1/|V_g| (bf16),
        # padded node columns of P are exactly zero; f32 accumulation.
        graph_out_ref[...] = jnp.dot(p_ref[...], z.astype(jnp.bfloat16),
                                     preferred_element_type=jnp.float32)


# ---------------------------------------------------------------------------
# Parameter init (deterministic; mirrors shapes from GIN.__init__)
# ---------------------------------------------------------------------------
def init_params(key, num_layers, emb_dim):
    params = []
    D = emb_dim
    for _ in range(num_layers):
        key, k1, k2, k3, k4, k5, k6 = jax.random.split(key, 7)
        s1 = 1.0 / jnp.sqrt(jnp.float32(D))
        s2 = 1.0 / jnp.sqrt(jnp.float32(2 * D))
        params.append(dict(
            w1=jax.random.uniform(k1, (D, 2 * D), jnp.float32, -s1, s1),
            b1=jax.random.uniform(k2, (1, 2 * D), jnp.float32, -s1, s1),
            w2=jax.random.uniform(k3, (2 * D, D), jnp.float32, -s2, s2),
            b2=jax.random.uniform(k4, (1, D), jnp.float32, -s2, s2),
            e1=jax.random.normal(k5, (6, D), jnp.float32),   # edge_embedding1
            e2=jax.random.normal(k6, (3, D), jnp.float32),   # edge_embedding2
            gamma=jnp.ones((1, D), jnp.float32),              # BN weight
            beta=jnp.zeros((1, D), jnp.float32),              # BN bias
        ))
    return params


# ---------------------------------------------------------------------------
# Forward pass (glue in plain JAX, the whole hot path in one Pallas call)
# ---------------------------------------------------------------------------
@functools.partial(jax.jit, static_argnames=("num_graphs",))
def gin_forward(params, x, edge_index, edge_attr, batch, num_graphs):
    N, D = x.shape
    L = len(params)
    Np = _round_up(N, 256)            # full-width MXU contraction (v6e/v7x)
    Dp = _round_up(D, 128)            # lane-dense features & weights
    Bp = _round_up(num_graphs, 8)

    # Column-tile size for streaming A; KT == 1 keeps A VMEM-resident.
    if Np * Np * 2 <= A_RESIDENT_BYTES:
        tk = Np
    else:
        tk = 512 if Np % 512 == 0 else 256
    KT = Np // tk

    src = edge_index[0].astype(jnp.int32)
    dst = edge_index[1].astype(jnp.int32)

    # Layer-invariant dense adjacency A[dst, src] (counts parallel edges);
    # built via scatter-add, exact in bf16 for small integer counts.
    A = (jnp.zeros((Np, Np), jnp.float32)
         .at[dst, src].add(1.0)
         .astype(jnp.bfloat16))

    x_pad = _pad2(x.astype(jnp.float32), Np, Dp)

    # Per-layer stacked params and edge-embedding aggregates (eagg in bf16:
    # halves the only large per-layer HBM stream; BN renormalizes right after).
    eagg, w1, b1, w2, b2, gamma, beta = [], [], [], [], [], [], []
    for p in params:
        emb = (jnp.take(p['e1'], edge_attr[:, 0], axis=0) +
               jnp.take(p['e2'], edge_attr[:, 1], axis=0))          # [E, D]
        ea = jax.ops.segment_sum(emb, dst, num_segments=Np)         # [Np, D]
        eagg.append(_pad2(ea, Np, Dp).astype(jnp.bfloat16))
        w1.append(_pad2(p['w1'], Dp, 2 * Dp).astype(jnp.bfloat16))
        b1.append(_pad2(p['b1'], 1, 2 * Dp))
        w2.append(_pad2(p['w2'], 2 * Dp, Dp).astype(jnp.bfloat16))
        b2.append(_pad2(p['b2'], 1, Dp))
        gamma.append(_pad2(p['gamma'], 1, Dp))
        beta.append(_pad2(p['beta'], 1, Dp))
    eagg = jnp.stack(eagg)
    w1 = jnp.stack(w1); b1 = jnp.stack(b1)
    w2 = jnp.stack(w2); b2 = jnp.stack(b2)
    gamma = jnp.stack(gamma); beta = jnp.stack(beta)

    # Count-normalized pooling matrix P[g, i] = 1/|V_g| (bf16 MXU operand).
    onehot = jax.nn.one_hot(batch, num_graphs, dtype=jnp.float32).T  # [B, N]
    counts = jnp.maximum(jnp.sum(onehot, axis=1, keepdims=True), 1.0)
    P = _pad2(onehot / counts, Bp, Np).astype(jnp.bfloat16)

    # Explicit scoped-VMEM budget computed from the actual resident footprint.
    f32b, bf16b = 4, 2
    a_bufs = 1 if KT == 1 else 2
    vmem_bytes = (
        Np * tk * bf16b * a_bufs                      # A tile(s)
        + Np * Dp * f32b                              # h scratch
        + Np * Dp * f32b                              # agg scratch
        + Np * 128 * f32b                             # row mask (lane-padded)
        + 2 * Np * Dp * bf16b                         # eagg (double-buffered)
        + 2 * (Dp * 2 * Dp + 2 * Dp * Dp) * bf16b     # w1/w2 (double-buffered)
        + 2 * Np * Dp * f32b                          # node_out
        + 2 * Bp * Dp * f32b                          # graph_out
        + Bp * Np * bf16b                             # P (single-buffered)
        + Np * 2 * Dp * f32b                          # [Np, 2*Dp] MLP temp
        + (2 << 20)                                   # biases / BN / misc slack
    )
    vmem_limit = max(32 << 20, min(int(vmem_bytes * 1.25) + (4 << 20),
                                   127 << 20))

    kernel = functools.partial(_gin_fused_kernel,
                               n_real=N, inv_n=1.0 / float(N), tk=tk)

    const2 = lambda l, k: (0, 0)
    per_layer = lambda l, k: (l, 0, 0)

    node_pad, graph_pad = pl.pallas_call(
        kernel,
        out_shape=(jax.ShapeDtypeStruct((Np, Dp), jnp.float32),
                   jax.ShapeDtypeStruct((Bp, Dp), jnp.float32)),
        grid_spec=pltpu.PrefetchScalarGridSpec(
            num_scalar_prefetch=0,
            grid=(L, KT),
            in_specs=[
                pl.BlockSpec(memory_space=pl.ANY),            # x (stays in HBM)
                _bspec((Np, tk), lambda l, k: (0, k),
                       single_buffer=(KT == 1)),              # A column tile(s)
                pl.BlockSpec((None, Np, Dp), per_layer),      # eagg[l] (bf16)
                pl.BlockSpec((None, Dp, 2 * Dp), per_layer),  # w1[l]
                pl.BlockSpec((None, 1, 2 * Dp), per_layer),   # b1[l]
                pl.BlockSpec((None, 2 * Dp, Dp), per_layer),  # w2[l]
                pl.BlockSpec((None, 1, Dp), per_layer),       # b2[l]
                pl.BlockSpec((None, 1, Dp), per_layer),       # gamma[l]
                pl.BlockSpec((None, 1, Dp), per_layer),       # beta[l]
                _bspec((Bp, Np), const2, single_buffer=True), # P (pool, bf16)
            ],
            out_specs=(pl.BlockSpec((Np, Dp), const2),
                       pl.BlockSpec((Bp, Dp), const2)),
            scratch_shapes=[pltpu.VMEM((Np, Dp), jnp.float32),   # h carry
                            pltpu.VMEM((Np, Dp), jnp.float32),   # agg accumulator
                            pltpu.VMEM((Np, 1), jnp.float32)],   # row mask
        ),
        compiler_params=pltpu.CompilerParams(
            dimension_semantics=("arbitrary", "arbitrary"),  # both axes carry state
            vmem_limit_bytes=vmem_limit,
        ),
    )(x_pad, A, eagg, w1, b1, w2, b2, gamma, beta, P)

    return node_pad[:N, :D], graph_pad[:num_graphs, :D]


# ---------------------------------------------------------------------------
if __name__ == "__main__":
    num_layers = 5
    emb_dim = 32          # small stand-in for 300
    N = 16                # nodes
    E = 32                # edges
    B = 2                 # graphs

    key = jax.random.PRNGKey(0)
    kp, kx, ke, ka1, ka2 = jax.random.split(key, 5)

    params = init_params(kp, num_layers, emb_dim)

    x = jax.random.normal(kx, (N, emb_dim), jnp.float32)
    edge_index = jax.random.randint(ke, (2, E), 0, N, dtype=jnp.int32)
    edge_attr = jnp.stack([
        jax.random.randint(ka1, (E,), 0, 6, dtype=jnp.int32),
        jax.random.randint(ka2, (E,), 0, 3, dtype=jnp.int32),
    ], axis=1)                                               # [E, 2]
    batch = jnp.concatenate([jnp.zeros((N // 2,), jnp.int32),
                             jnp.ones((N - N // 2,), jnp.int32)])

    node_emb, graph_emb = gin_forward(params, x, edge_index, edge_attr,
                                      batch, num_graphs=B)
    jax.block_until_ready((node_emb, graph_emb))

    assert node_emb.shape == (N, emb_dim)
    assert graph_emb.shape == (B, emb_dim)
    assert bool(jnp.all(jnp.isfinite(node_emb)))
    assert bool(jnp.all(jnp.isfinite(graph_emb)))
    print("KERNEL_OK")
</pallas_src>

<mosaic_0001>
module attributes {stable_mosaic.version = 11 : i64} {
  func.func private @main(%arg0: i32) attributes {dimension_semantics = [#tpu.dimension_semantics<core_parallel>], iteration_bounds = array<i64: 2>, tpu.core_type = #tpu.core_type<sc_scalar_subcore>, window_params = []} {
    return
  }
}

module attributes {stable_mosaic.version = 11 : i64} {
  func.func private @main(%arg0: i32) attributes {dimension_semantics = [#tpu.dimension_semantics<core_parallel>], iteration_bounds = array<i64: 2>, tpu.core_type = #tpu.core_type<sc_scalar_subcore>, window_params = []} {
    return
  }
}

module attributes {stable_mosaic.version = 11 : i64} {
  func.func @_gin_fused_kernel(%arg0: i32, %arg1: i32, %arg2: memref<256x128xf32, #tpu.memory_space<any>>, %arg3: memref<256x256xbf16, #tpu.memory_space<vmem>>, %arg4: memref<1x256x128xbf16, #tpu.memory_space<vmem>>, %arg5: memref<1x128x256xbf16, #tpu.memory_space<vmem>>, %arg6: memref<1x1x256xf32, #tpu.memory_space<vmem>>, %arg7: memref<1x256x128xbf16, #tpu.memory_space<vmem>>, %arg8: memref<1x1x128xf32, #tpu.memory_space<vmem>>, %arg9: memref<1x1x128xf32, #tpu.memory_space<vmem>>, %arg10: memref<1x1x128xf32, #tpu.memory_space<vmem>>, %arg11: memref<8x256xbf16, #tpu.memory_space<vmem>>, %arg12: memref<256x128xf32, #tpu.memory_space<vmem>>, %arg13: memref<8x128xf32, #tpu.memory_space<vmem>>, %arg14: memref<256x128xf32, #tpu.memory_space<vmem>>, %arg15: memref<256x128xf32, #tpu.memory_space<vmem>>, %arg16: memref<256x1xf32, #tpu.memory_space<vmem>>) attributes {dimension_semantics = [#tpu.dimension_semantics<arbitrary>, #tpu.dimension_semantics<arbitrary>], iteration_bounds = array<i64: 5, 1>, scalar_prefetch = 0 : i64, scratch_operands = 3 : i64, tpu.core_type = #tpu.core_type<tc>, window_params = [{}, {pipeline_mode = #tpu.pipeline_mode<synchronous>, transform_indices = @transform_1, window_bounds = array<i64: 256, 256>}, {transform_indices = @transform_2, window_bounds = array<i64: 1, 256, 128>}, {transform_indices = @transform_3, window_bounds = array<i64: 1, 128, 256>}, {transform_indices = @transform_4, window_bounds = array<i64: 1, 1, 256>}, {transform_indices = @transform_5, window_bounds = array<i64: 1, 256, 128>}, {transform_indices = @transform_6, window_bounds = array<i64: 1, 1, 128>}, {transform_indices = @transform_7, window_bounds = array<i64: 1, 1, 128>}, {transform_indices = @transform_8, window_bounds = array<i64: 1, 1, 128>}, {pipeline_mode = #tpu.pipeline_mode<synchronous>, transform_indices = @transform_9, window_bounds = array<i64: 8, 256>}, {pipeline_mode = #tpu.pipeline_mode<synchronous>, transform_indices = @transform_10, window_bounds = array<i64: 256, 128>}, {pipeline_mode = #tpu.pipeline_mode<synchronous>, transform_indices = @transform_11, window_bounds = array<i64: 8, 128>}]} {
    %c0_i32 = arith.constant 0 : i32
    %0 = arith.cmpi eq, %arg0, %c0_i32 : i32
    %c0_i32_0 = arith.constant 0 : i32
    %1 = arith.cmpi eq, %arg1, %c0_i32_0 : i32
    %2 = arith.andi %0, %1 : i1
    %3 = arith.extui %2 : i1 to i32
    %c0_i32_1 = arith.constant 0 : i32
    %4 = arith.cmpi ne, %3, %c0_i32_1 : i32
    scf.if %4 {
      "tpu.region"() ({
        %32 = tpu.sem_alloc : memref<!tpu.dma_semaphore, #tpu.memory_space<semaphore_mem>>
        tpu.enqueue_dma source(%arg2 : memref<256x128xf32, #tpu.memory_space<any>>) target(%arg14 : memref<256x128xf32, #tpu.memory_space<vmem>>) target_semaphore(%32 : memref<!tpu.dma_semaphore, #tpu.memory_space<semaphore_mem>>)
        tpu.wait_dma2 semaphore(%32 : memref<!tpu.dma_semaphore, #tpu.memory_space<semaphore_mem>>) src(%arg2 : memref<256x128xf32, #tpu.memory_space<any>>) dst(%arg14 : memref<256x128xf32, #tpu.memory_space<vmem>>)
        tpu.yield
      }) : () -> ()
      %26 = tpu.iota {dimensions = array<i32: 0>} : vector<256x1xi32>
      %c16_i32 = arith.constant 16 : i32
      %27 = vector.broadcast %c16_i32 : i32 to vector<256x1xi32>
      %28 = arith.cmpi slt, %26, %27 : vector<256x1xi32>
      %29 = arith.extui %28 : vector<256x1xi1> to vector<256x1xi32>
      %30 = arith.sitofp %29 : vector<256x1xi32> to vector<256x1xf32>
      %c0_14 = arith.constant 0 : index
      %c0_15 = arith.constant 0 : index
      %31 = vector.load %arg16[%c0_14, %c0_15] : memref<256x1xf32, #tpu.memory_space<vmem>>, vector<256x1xf32>
      tpu.vector_store %arg16[%c0_14, %c0_15], %30 {strides = array<i32>} : memref<256x1xf32, #tpu.memory_space<vmem>>, vector<256x1xf32>,
    } else {
    }
    %c0_i32_2 = arith.constant 0 : i32
    %5 = arith.cmpi eq, %arg1, %c0_i32_2 : i32
    %6 = arith.extui %5 : i1 to i32
    %c0_i32_3 = arith.constant 0 : i32
    %7 = arith.cmpi ne, %6, %c0_i32_3 : i32
    scf.if %7 {
      %c0_14 = arith.constant 0 : index
      %c0_15 = arith.constant 0 : index
      %26 = vector.load %arg14[%c0_14, %c0_15] : memref<256x128xf32, #tpu.memory_space<vmem>>, vector<256x128xf32>
      %c0_16 = arith.constant 0 : index
      %c0_17 = arith.constant 0 : index
      %27 = vector.load %arg15[%c0_16, %c0_17] : memref<256x128xf32, #tpu.memory_space<vmem>>, vector<256x128xf32>
      tpu.vector_store %arg15[%c0_16, %c0_17], %26 {strides = array<i32>} : memref<256x128xf32, #tpu.memory_space<vmem>>, vector<256x128xf32>,
    } else {
    }
    %c256_i32 = arith.constant 256 : i32
    %8 = arith.muli %arg1, %c256_i32 : i32
    %9 = tpu.assume_multiple %8, 256 : i32
    %10 = arith.index_cast %9 : i32 to index
    %c0 = arith.constant 0 : index
    %11 = vector.load %arg14[%10, %c0] : memref<256x128xf32, #tpu.memory_space<vmem>>, vector<256x128xf32>
    %c0_4 = arith.constant 0 : index
    %c0_5 = arith.constant 0 : index
    %12 = vector.load %arg15[%c0_4, %c0_5] : memref<256x128xf32, #tpu.memory_space<vmem>>, vector<256x128xf32>
    %c0_6 = arith.constant 0 : index
    %c0_7 = arith.constant 0 : index
    %13 = vector.load %arg3[%c0_6, %c0_7] : memref<256x256xbf16, #tpu.memory_space<vmem>>, vector<256x256xbf16>
    %14 = arith.truncf %11 : vector<256x128xf32> to vector<256x128xbf16>
    %cst = arith.constant dense<0.000000e+00> : vector<256x128xf32>
    %15 = tpu.matmul %13, %14, %cst {dimension_numbers = #tpu.dot_dimension_numbers<[1], [0], [0], [1], [0, 0, 1, 1], [], []>} : vector<256x256xbf16>, vector<256x128xbf16>, vector<256x128xf32> -> vector<256x128xf32>
    %16 = arith.addf %12, %15 : vector<256x128xf32>
    %c0_8 = arith.constant 0 : index
    %c0_9 = arith.constant 0 : index
    %17 = vector.load %arg15[%c0_8, %c0_9] : memref<256x128xf32, #tpu.memory_space<vmem>>, vector<256x128xf32>
    tpu.vector_store %arg15[%c0_8, %c0_9], %16 {strides = array<i32>} : memref<256x128xf32, #tpu.memory_space<vmem>>, vector<256x128xf32>,
    %c0_i32_10 = arith.constant 0 : i32
    %18 = arith.cmpi eq, %arg1, %c0_i32_10 : i32
    %19 = arith.extui %18 : i1 to i32
    %c0_i32_11 = arith.constant 0 : i32
    %20 = arith.cmpi ne, %19, %c0_i32_11 : i32
    scf.if %20 {
      %c0_14 = arith.constant 0 : index
      %c0_15 = arith.constant 0 : index
      %26 = vector.load %arg15[%c0_14, %c0_15] : memref<256x128xf32, #tpu.memory_space<vmem>>, vector<256x128xf32>
      %c0_16 = arith.constant 0 : index
      %c0_17 = arith.constant 0 : index
      %c0_18 = arith.constant 0 : index
      %27 = vector.load %arg4[%c0_16, %c0_17, %c0_18] : memref<1x256x128xbf16, #tpu.memory_space<vmem>>, vector<1x256x128xbf16>
      %28 = vector.shape_cast %27 : vector<1x256x128xbf16> to vector<256x128xbf16>
      %29 = arith.extf %28 : vector<256x128xbf16> to vector<256x128xf32>
      %30 = arith.addf %26, %29 : vector<256x128xf32>
      %31 = arith.truncf %30 : vector<256x128xf32> to vector<256x128xbf16>
      %c0_19 = arith.constant 0 : index
      %c0_20 = arith.constant 0 : index
      %c0_21 = arith.constant 0 : index
      %32 = vector.load %arg5[%c0_19, %c0_20, %c0_21] : memref<1x128x256xbf16, #tpu.memory_space<vmem>>, vector<1x128x256xbf16>
      %33 = vector.shape_cast %32 : vector<1x128x256xbf16> to vector<128x256xbf16>
      %cst_22 = arith.constant dense<0.000000e+00> : vector<256x256xf32>
      %34 = tpu.matmul %31, %33, %cst_22 {dimension_numbers = #tpu.dot_dimension_numbers<[1], [0], [0], [1], [0, 0, 1, 1], [], []>} : vector<256x128xbf16>, vector<128x256xbf16>, vector<256x256xf32> -> vector<256x256xf32>
      %c0_23 = arith.constant 0 : index
      %c0_24 = arith.constant 0 : index
      %c0_25 = arith.constant 0 : index
      %35 = vector.load %arg6[%c0_23, %c0_24, %c0_25] : memref<1x1x256xf32, #tpu.memory_space<vmem>>, vector<1x1x256xf32>
      %36 = vector.shape_cast %35 : vector<1x1x256xf32> to vector<1x256xf32>
      %37 = vector.broadcast %36 : vector<1x256xf32> to vector<256x256xf32>
      %38 = arith.addf %34, %37 : vector<256x256xf32>
      %cst_26 = arith.constant 0.000000e+00 : f32
      %39 = vector.broadcast %cst_26 : f32 to vector<256x256xf32>
      %40 = arith.maximumf %38, %39 : vector<256x256xf32>
      %41 = arith.truncf %40 : vector<256x256xf32> to vector<256x256xbf16>
      %c0_27 = arith.constant 0 : index
      %c0_28 = arith.constant 0 : index
      %c0_29 = arith.constant 0 : index
      %42 = vector.load %arg7[%c0_27, %c0_28, %c0_29] : memref<1x256x128xbf16, #tpu.memory_space<vmem>>, vector<1x256x128xbf16>
      %43 = vector.shape_cast %42 : vector<1x256x128xbf16> to vector<256x128xbf16>
      %cst_30 = arith.constant dense<0.000000e+00> : vector<256x128xf32>
      %44 = tpu.matmul %41, %43, %cst_30 {dimension_numbers = #tpu.dot_dimension_numbers<[1], [0], [0], [1], [0, 0, 1, 1], [], []>} : vector<256x256xbf16>, vector<256x128xbf16>, vector<256x128xf32> -> vector<256x128xf32>
      %c0_31 = arith.constant 0 : index
      %c0_32 = arith.constant 0 : index
      %c0_33 = arith.constant 0 : index
      %45 = vector.load %arg8[%c0_31, %c0_32, %c0_33] : memref<1x1x128xf32, #tpu.memory_space<vmem>>, vector<1x1x128xf32>
      %46 = vector.shape_cast %45 : vector<1x1x128xf32> to vector<1x128xf32>
      %47 = vector.broadcast %46 : vector<1x128xf32> to vector<256x128xf32>
      %48 = arith.addf %44, %47 : vector<256x128xf32>
      %c0_34 = arith.constant 0 : index
      %c0_35 = arith.constant 0 : index
      %49 = vector.load %arg16[%c0_34, %c0_35] : memref<256x1xf32, #tpu.memory_space<vmem>>, vector<256x1xf32>
      %50 = vector.broadcast %49 : vector<256x1xf32> to vector<256x128xf32>
      %51 = arith.mulf %48, %50 : vector<256x128xf32>
      %cst_36 = arith.constant dense<0.000000e+00> : vector<128xf32>
      %52 = vector.multi_reduction <add>, %51, %cst_36 [0] : vector<256x128xf32> to vector<128xf32>
      %53 = vector.shape_cast %52 : vector<128xf32> to vector<1x128xf32>
      %54 = arith.mulf %51, %51 : vector<256x128xf32>
      %cst_37 = arith.constant dense<0.000000e+00> : vector<128xf32>
      %55 = vector.multi_reduction <add>, %54, %cst_37 [0] : vector<256x128xf32> to vector<128xf32>
      %56 = vector.shape_cast %55 : vector<128xf32> to vector<1x128xf32>
      %cst_38 = arith.constant 6.250000e-02 : f32
      %57 = vector.broadcast %cst_38 : f32 to vector<1x128xf32>
      %58 = arith.mulf %53, %57 : vector<1x128xf32>
      %cst_39 = arith.constant 6.250000e-02 : f32
      %59 = vector.broadcast %cst_39 : f32 to vector<1x128xf32>
      %60 = arith.mulf %56, %59 : vector<1x128xf32>
      %61 = arith.mulf %58, %58 : vector<1x128xf32>
      %62 = arith.subf %60, %61 : vector<1x128xf32>
      %cst_40 = arith.constant 0.000000e+00 : f32
      %63 = vector.broadcast %cst_40 : f32 to vector<1x128xf32>
      %64 = arith.maximumf %62, %63 : vector<1x128xf32>
      %c0_41 = arith.constant 0 : index
      %c0_42 = arith.constant 0 : index
      %c0_43 = arith.constant 0 : index
      %65 = vector.load %arg9[%c0_41, %c0_42, %c0_43] : memref<1x1x128xf32, #tpu.memory_space<vmem>>, vector<1x1x128xf32>
      %66 = vector.shape_cast %65 : vector<1x1x128xf32> to vector<1x128xf32>
      %cst_44 = arith.constant 9.99999974E-6 : f32
      %67 = vector.broadcast %cst_44 : f32 to vector<1x128xf32>
      %68 = arith.addf %64, %67 : vector<1x128xf32>
      %69 = math.rsqrt %68 : vector<1x128xf32>
      %70 = arith.mulf %66, %69 : vector<1x128xf32>
      %c0_45 = arith.constant 0 : index
      %c0_46 = arith.constant 0 : index
      %c0_47 = arith.constant 0 : index
      %71 = vector.load %arg10[%c0_45, %c0_46, %c0_47] : memref<1x1x128xf32, #tpu.memory_space<vmem>>, vector<1x1x128xf32>
      %72 = vector.shape_cast %71 : vector<1x1x128xf32> to vector<1x128xf32>
      %73 = arith.mulf %58, %70 : vector<1x128xf32>
      %74 = arith.subf %72, %73 : vector<1x128xf32>
      %75 = vector.broadcast %70 : vector<1x128xf32> to vector<256x128xf32>
      %76 = arith.mulf %51, %75 : vector<256x128xf32>
      %77 = vector.broadcast %74 : vector<1x128xf32> to vector<256x128xf32>
      %78 = arith.addf %76, %77 : vector<256x128xf32>
      %cst_48 = arith.constant 0.000000e+00 : f32
      %79 = vector.broadcast %cst_48 : f32 to vector<256x128xf32>
      %80 = arith.maximumf %78, %79 : vector<256x128xf32>
      %c0_49 = arith.constant 0 : index
      %c0_50 = arith.constant 0 : index
      %81 = vector.load %arg14[%c0_49, %c0_50] : memref<256x128xf32, #tpu.memory_space<vmem>>, vector<256x128xf32>
      tpu.vector_store %arg14[%c0_49, %c0_50], %80 {strides = array<i32>} : memref<256x128xf32, #tpu.memory_space<vmem>>, vector<256x128xf32>,
    } else {
    }
    %c0_i32_12 = arith.constant 0 : i32
    %21 = arith.cmpi eq, %arg1, %c0_i32_12 : i32
    %c4_i32 = arith.constant 4 : i32
    %22 = arith.cmpi eq, %arg0, %c4_i32 : i32
    %23 = arith.andi %21, %22 : i1
    %24 = arith.extui %23 : i1 to i32
    %c0_i32_13 = arith.constant 0 : i32
    %25 = arith.cmpi ne, %24, %c0_i32_13 : i32
    scf.if %25 {
      %c0_14 = arith.constant 0 : index
      %c0_15 = arith.constant 0 : index
      %26 = vector.load %arg14[%c0_14, %c0_15] : memref<256x128xf32, #tpu.memory_space<vmem>>, vector<256x128xf32>
      %c0_16 = arith.constant 0 : index
      %c0_17 = arith.constant 0 : index
      %27 = vector.load %arg12[%c0_16, %c0_17] : memref<256x128xf32, #tpu.memory_space<vmem>>, vector<256x128xf32>
      tpu.vector_store %arg12[%c0_16, %c0_17], %26 {strides = array<i32>} : memref<256x128xf32, #tpu.memory_space<vmem>>, vector<256x128xf32>,
      %c0_18 = arith.constant 0 : index
      %c0_19 = arith.constant 0 : index
      %28 = vector.load %arg11[%c0_18, %c0_19] : memref<8x256xbf16, #tpu.memory_space<vmem>>, vector<8x256xbf16>
      %29 = arith.truncf %26 : vector<256x128xf32> to vector<256x128xbf16>
      %cst_20 = arith.constant dense<0.000000e+00> : vector<8x128xf32>
      %30 = tpu.matmul %28, %29, %cst_20 {dimension_numbers = #tpu.dot_dimension_numbers<[1], [0], [0], [1], [0, 0, 1, 1], [], []>} : vector<8x256xbf16>, vector<256x128xbf16>, vector<8x128xf32> -> vector<8x128xf32>
      %c0_21 = arith.constant 0 : index
      %c0_22 = arith.constant 0 : index
      %31 = vector.load %arg13[%c0_21, %c0_22] : memref<8x128xf32, #tpu.memory_space<vmem>>, vector<8x128xf32>
      tpu.vector_store %arg13[%c0_21, %c0_22], %30 {strides = array<i32>} : memref<8x128xf32, #tpu.memory_space<vmem>>, vector<8x128xf32>,
    } else {
    }
    return
  }
  func.func @transform_1(%arg0: i32, %arg1: i32) -> (i32, i32) {
    %c0_i32 = arith.constant 0 : i32
    %c0_i32_0 = arith.constant 0 : i32
    return %c0_i32, %arg1 : i32, i32
  }
  func.func @transform_2(%arg0: i32, %arg1: i32) -> (i32, i32, i32) {
    %c0_i32 = arith.constant 0 : i32
    %c0_i32_0 = arith.constant 0 : i32
    %c0_i32_1 = arith.constant 0 : i32
    return %arg0, %c0_i32, %c0_i32_0 : i32, i32, i32
  }
  func.func @transform_3(%arg0: i32, %arg1: i32) -> (i32, i32, i32) {
    %c0_i32 = arith.constant 0 : i32
    %c0_i32_0 = arith.constant 0 : i32
    %c0_i32_1 = arith.constant 0 : i32
    return %arg0, %c0_i32, %c0_i32_0 : i32, i32, i32
  }
  func.func @transform_4(%arg0: i32, %arg1: i32) -> (i32, i32, i32) {
    %c0_i32 = arith.constant 0 : i32
    %c0_i32_0 = arith.constant 0 : i32
    %c0_i32_1 = arith.constant 0 : i32
    return %arg0, %c0_i32, %c0_i32_0 : i32, i32, i32
  }
  func.func @transform_5(%arg0: i32, %arg1: i32) -> (i32, i32, i32) {
    %c0_i32 = arith.constant 0 : i32
    %c0_i32_0 = arith.constant 0 : i32
    %c0_i32_1 = arith.constant 0 : i32
    return %arg0, %c0_i32, %c0_i32_0 : i32, i32, i32
  }
  func.func @transform_6(%arg0: i32, %arg1: i32) -> (i32, i32, i32) {
    %c0_i32 = arith.constant 0 : i32
    %c0_i32_0 = arith.constant 0 : i32
    %c0_i32_1 = arith.constant 0 : i32
    return %arg0, %c0_i32, %c0_i32_0 : i32, i32, i32
  }
  func.func @transform_7(%arg0: i32, %arg1: i32) -> (i32, i32, i32) {
    %c0_i32 = arith.constant 0 : i32
    %c0_i32_0 = arith.constant 0 : i32
    %c0_i32_1 = arith.constant 0 : i32
    return %arg0, %c0_i32, %c0_i32_0 : i32, i32, i32
  }
  func.func @transform_8(%arg0: i32, %arg1: i32) -> (i32, i32, i32) {
    %c0_i32 = arith.constant 0 : i32
    %c0_i32_0 = arith.constant 0 : i32
    %c0_i32_1 = arith.constant 0 : i32
    return %arg0, %c0_i32, %c0_i32_0 : i32, i32, i32
  }
  func.func @transform_9(%arg0: i32, %arg1: i32) -> (i32, i32) {
    %c0_i32 = arith.constant 0 : i32
    %c0_i32_0 = arith.constant 0 : i32
    %c0_i32_1 = arith.constant 0 : i32
    return %c0_i32, %c0_i32_0 : i32, i32
  }
  func.func @transform_10(%arg0: i32, %arg1: i32) -> (i32, i32) {
    %c0_i32 = arith.constant 0 : i32
    %c0_i32_0 = arith.constant 0 : i32
    %c0_i32_1 = arith.constant 0 : i32
    return %c0_i32, %c0_i32_0 : i32, i32
  }
  func.func @transform_11(%arg0: i32, %arg1: i32) -> (i32, i32) {
    %c0_i32 = arith.constant 0 : i32
    %c0_i32_0 = arith.constant 0 : i32
    %c0_i32_1 = arith.constant 0 : i32
    return %c0_i32, %c0_i32_0 : i32, i32
  }
}

</mosaic_0001>

<bundles_post_ra>
// kernel: gin_forward.1
= control target key start
LH: loop header
LB: loop body
LE: loop exit
PB: predicated region body
PF: predicated region fallthrough
CT: control target
= control target key end

     0   :  { %s3545_s17 = smov 0   ;;  %s3547_s18 = smov 0   ;;  %s4529_s0 = inlined_call_operand.vmem [shape: f32[256,128], index: 0, kind: input, shape index: {}]   ;;  %s4530_s1 = inlined_call_operand.vmem [shape: bf16[256,256], index: 1, kind: input, shape index: {}]   ;;  %s4531_s2 = inlined_call_operand.vmem [shape: bf16[5,256,128], index: 2, kind: input, shape index: {}]   ;;  %s4532_s3 = inlined_call_operand.vmem [shape: bf16[5,128,256], index: 3, kind: input, shape index: {}]   ;;  %s4533_s4 = inlined_call_operand.vmem [shape: f32[5,1,256], index: 4, kind: input, shape index: {}]   ;;  %s4534_s5 = inlined_call_operand.vmem [shape: bf16[5,256,128], index: 5, kind: input, shape index: {}]   ;;  %s4535_s6 = inlined_call_operand.vmem [shape: f32[5,1,128], index: 6, kind: input, shape index: {}]   ;;  %s4536_s7 = inlined_call_operand.vmem [shape: f32[5,1,128], index: 7, kind: input, shape index: {}]   ;;  %s4537_s8 = inlined_call_operand.vmem [shape: f32[5,1,128], index: 8, kind: input, shape index: {}]   ;;  %s4538_s9 = inlined_call_operand.vmem [shape: bf16[8,256], index: 9, kind: input, shape index: {}]   ;;  %s4539_s10 = inlined_call_operand.vmem [shape: f32[256,128], index: 10, kind: output, shape index: {0}]   ;;  %s4540_s11 = inlined_call_operand.vmem [shape: f32[8,128], index: 11, kind: output, shape index: {1}]  }
   0x1   :  { %4543 = sst [smem:[#allocation11_spill]] %s4531_s2  ;;  %s3549_s19 = smov 0  }
   0x2   :  { %4544 = sst [smem:[#allocation12_spill]] %s4532_s3 }
   0x3 LB: > { %4545 = sst [smem:[#allocation8_spill]] %s3476_s18  ;;  %s34_s20 = sadd.s32 1, %s3476_s18  ;;  %s3480_s19 = sphi %s3549_s19, %s22_s19   ;;  %s3476_s18 = sphi %s3547_s18, %s4552_s18   ;;  %s3472_s17 = sphi %s3545_s17, %s4551_s17  }
   0x4   : > { %4546 = sst [smem:[#allocation9_spill]] %s3480_s19  ;;  %p2910_p0 = scmp.ge.s32.totalorder %s3480_s19, 1 }
   0x5   : > { %p36_p1 = scmp.ge.s32.totalorder %s34_s20, 5  ;;  %p382_p2 = scmp.lt.s32.totalorder %s3480_s19, 6 }
   0x7   : > { %s4554_s20 = smov (%p36_p1, %s34_s20), 0  ;;  %p383_p3 = pnand %p2910_p0, %p382_p2 }
   0x8   : > { %4547 = sst [smem:[#allocation10_spill]] %s4554_s20  ;;  %p449_p4 = scmp.lt.s32.totalorder (!%p383_p3), %s3472_s17, 4 }
   0x9   : > { %386 = sbr.rel (%p383_p3) target bundleno = 1205 (0x4b5), region = 56  ;;  %p478_p5 = scmp.eq.s32.totalorder (!%p383_p3), %s3472_s17, 0 }
   0xa   : > { %s4548_s2 = sld [smem:[#allocation11_spill]] (!%p383_p3)  ;;  %s4549_s3 = sld [smem:[#allocation12_spill]] (!%p383_p3) }
  0x10   : > { %s3568_s21 = scalar_select %p449_p4, %s3472_s17, 4 }
  0x11   : > { %483 = sbr.rel (!%p478_p5) target bundleno = 60 (0x3c), region = 60 }
  0x12   : > { %s2989_s22 = sshll.u32 %s3568_s21, 7  ;;  %s2915_s23 = sshll.u32 %s3568_s21, 1 }
  0x13   : > { %s3575_s26 = scalar_lea.vmem %s4548_s2, %s2989_s22  ;;  %s3580_s29 = scalar_lea.vmem %s4549_s3, %s2989_s22 }
  0x14   : > { %s3585_s13 = scalar_lea.vmem %s4533_s4, %s2915_s23  ;;  %s3590_s16 = scalar_lea.vmem %s4534_s5, %s2989_s22 }
  0x15   : > { %s470_s24 = scalar_lea.vmem %s4535_s6, %s3568_s21  ;;  %s473_s27 = scalar_lea.vmem %s4536_s7, %s3568_s21 }
  0x16   : > { %s476_s19 = scalar_lea.vmem %s4537_s8, %s3568_s21 }
  0x18   : > { %v516_v0 = vld [vmem:[%s4529_s0] sm:$0xff]  ;;  %v518_v1 = vld [vmem:[%s4529_s0 + $0x8] sm:$0xff]  ;;  %v520_v2 = vld [vmem:[%s4529_s0 + $0x10] sm:$0xff] }
  0x19   : > { %517 = vst [vmem:[#allocation2] sm:$0xff] %v516_v0  ;;  %519 = vst [vmem:[#allocation2 + $0x8] sm:$0xff] %v518_v1  ;;  %v522_v3 = vld [vmem:[%s4529_s0 + $0x18] sm:$0xff]  ;;  %v524_v4 = vld [vmem:[%s4529_s0 + $0x20] sm:$0xff] }
  0x1a   : > { %521 = vst [vmem:[#allocation2 + $0x10] sm:$0xff] %v520_v2  ;;  %v526_v5 = vld [vmem:[%s4529_s0 + $0x28] sm:$0xff]  ;;  %523 = vst [vmem:[#allocation2 + $0x18] sm:$0xff] %v522_v3  ;;  %v528_v6 = vld [vmem:[%s4529_s0 + $0x30] sm:$0xff] }
  0x1b   : > { %525 = vst [vmem:[#allocation2 + $0x20] sm:$0xff] %v524_v4  ;;  %527 = vst [vmem:[#allocation2 + $0x28] sm:$0xff] %v526_v5  ;;  %v530_v7 = vld [vmem:[%s4529_s0 + $0x38] sm:$0xff]  ;;  %v532_v8 = vld [vmem:[%s4529_s0 + $0x40] sm:$0xff] }
  0x1c   : > { %529 = vst [vmem:[#allocation2 + $0x30] sm:$0xff] %v528_v6  ;;  %531 = vst [vmem:[#allocation2 + $0x38] sm:$0xff] %v530_v7  ;;  %v534_v9 = vld [vmem:[%s4529_s0 + $0x48] sm:$0xff]  ;;  %v536_v10 = vld [vmem:[%s4529_s0 + $0x50] sm:$0xff] }
  0x1d   : > { %533 = vst [vmem:[#allocation2 + $0x40] sm:$0xff] %v532_v8  ;;  %v538_v11 = vld [vmem:[%s4529_s0 + $0x58] sm:$0xff]  ;;  %535 = vst [vmem:[#allocation2 + $0x48] sm:$0xff] %v534_v9  ;;  %v540_v12 = vld [vmem:[%s4529_s0 + $0x60] sm:$0xff] }
  0x1e   : > { %537 = vst [vmem:[#allocation2 + $0x50] sm:$0xff] %v536_v10  ;;  %539 = vst [vmem:[#allocation2 + $0x58] sm:$0xff] %v538_v11  ;;  %v542_v13 = vld [vmem:[%s4529_s0 + $0x68] sm:$0xff]  ;;  %v544_v14 = vld [vmem:[%s4529_s0 + $0x70] sm:$0xff] }
  0x1f   : > { %541 = vst [vmem:[#allocation2 + $0x60] sm:$0xff] %v540_v12  ;;  %543 = vst [vmem:[#allocation2 + $0x68] sm:$0xff] %v542_v13  ;;  %v546_v15 = vld [vmem:[%s4529_s0 + $0x78] sm:$0xff]  ;;  %v548_v16 = vld [vmem:[%s4529_s0 + $0x80] sm:$0xff] }
  0x20   : > { %545 = vst [vmem:[#allocation2 + $0x70] sm:$0xff] %v544_v14  ;;  %v550_v17 = vld [vmem:[%s4529_s0 + $0x88] sm:$0xff]  ;;  %547 = vst [vmem:[#allocation2 + $0x78] sm:$0xff] %v546_v15  ;;  %v552_v18 = vld [vmem:[%s4529_s0 + $0x90] sm:$0xff] }
  0x21   : > { %549 = vst [vmem:[#allocation2 + $0x80] sm:$0xff] %v548_v16  ;;  %551 = vst [vmem:[#allocation2 + $0x88] sm:$0xff] %v550_v17  ;;  %v554_v19 = vld [vmem:[%s4529_s0 + $0x98] sm:$0xff]  ;;  %v556_v20 = vld [vmem:[%s4529_s0 + $0xa0] sm:$0xff] }
  0x22   : > { %553 = vst [vmem:[#allocation2 + $0x90] sm:$0xff] %v552_v18  ;;  %555 = vst [vmem:[#allocation2 + $0x98] sm:$0xff] %v554_v19  ;;  %v558_v21 = vld [vmem:[%s4529_s0 + $0xa8] sm:$0xff]  ;;  %v560_v22 = vld [vmem:[%s4529_s0 + $0xb0] sm:$0xff] }
  0x23   : > { %557 = vst [vmem:[#allocation2 + $0xa0] sm:$0xff] %v556_v20  ;;  %v562_v23 = vld [vmem:[%s4529_s0 + $0xb8] sm:$0xff]  ;;  %559 = vst [vmem:[#allocation2 + $0xa8] sm:$0xff] %v558_v21  ;;  %v564_v24 = vld [vmem:[%s4529_s0 + $0xc0] sm:$0xff] }
  0x24   : > { %561 = vst [vmem:[#allocation2 + $0xb0] sm:$0xff] %v560_v22  ;;  %563 = vst [vmem:[#allocation2 + $0xb8] sm:$0xff] %v562_v23  ;;  %v566_v25 = vld [vmem:[%s4529_s0 + $0xc8] sm:$0xff]  ;;  %v568_v26 = vld [vmem:[%s4529_s0 + $0xd0] sm:$0xff] }
  0x25   : > { %565 = vst [vmem:[#allocation2 + $0xc0] sm:$0xff] %v564_v24  ;;  %567 = vst [vmem:[#allocation2 + $0xc8] sm:$0xff] %v566_v25  ;;  %v570_v27 = vld [vmem:[%s4529_s0 + $0xd8] sm:$0xff]  ;;  %v572_v28 = vld [vmem:[%s4529_s0 + $0xe0] sm:$0xff] }
  0x26   : > { %569 = vst [vmem:[#allocation2 + $0xd0] sm:$0xff] %v568_v26  ;;  %v574_v29 = vld [vmem:[%s4529_s0 + $0xe8] sm:$0xff]  ;;  %571 = vst [vmem:[#allocation2 + $0xd8] sm:$0xff] %v570_v27  ;;  %v576_v30 = vld [vmem:[%s4529_s0 + $0xf0] sm:$0xff] }
  0x27   : > { %573 = vst [vmem:[#allocation2 + $0xe0] sm:$0xff] %v572_v28  ;;  %575 = vst [vmem:[#allocation2 + $0xe8] sm:$0xff] %v574_v29  ;;  %v578_v31 = vld [vmem:[%s4529_s0 + $0xf8] sm:$0xff] }
  0x28   : > { %577 = vst [vmem:[#allocation2 + $0xf0] sm:$0xff] %v576_v30  ;;  %579 = vst [vmem:[#allocation2 + $0xf8] sm:$0xff] %v578_v31 }
  0x29   : > { %587 = vsyncadd [#allocation5], 4096 }
  0x2a   : > { %3468 = dma.done.wait [#allocation5], 4096 }
  0x2b   : > { %3469 = vsyncadd [#allocation5], 4294963200  ;;  %vm720_vm0 = vcmask 7168   ;;  %v3482_v32 = vmov 1.0   ;;  %v3483_v33 = vmov 0.0  }
  0x2c   : > { %721 = vst.msk [vmem:[#allocation4] sm:$0xff] %vm720_vm0, %v3482_v32  ;;  %722 = vst.msk [vmem:[#allocation4 + $0x8] sm:$0xff] %vm720_vm0, %v3482_v32 }
  0x2d   : > { %723 = vst.msk [vmem:[#allocation4 + $0x10] sm:$0xff] %vm720_vm0, %v3483_v33  ;;  %724 = vst.msk [vmem:[#allocation4 + $0x18] sm:$0xff] %vm720_vm0, %v3483_v33 }
  0x2e   : > { %725 = vst.msk [vmem:[#allocation4 + $0x20] sm:$0xff] %vm720_vm0, %v3483_v33  ;;  %726 = vst.msk [vmem:[#allocation4 + $0x28] sm:$0xff] %vm720_vm0, %v3483_v33 }
  0x2f   : > { %727 = vst.msk [vmem:[#allocation4 + $0x30] sm:$0xff] %vm720_vm0, %v3483_v33  ;;  %728 = vst.msk [vmem:[#allocation4 + $0x38] sm:$0xff] %vm720_vm0, %v3483_v33 }
  0x30   : > { %729 = vst.msk [vmem:[#allocation4 + $0x40] sm:$0xff] %vm720_vm0, %v3483_v33  ;;  %730 = vst.msk [vmem:[#allocation4 + $0x48] sm:$0xff] %vm720_vm0, %v3483_v33 }
  0x31   : > { %731 = vst.msk [vmem:[#allocation4 + $0x50] sm:$0xff] %vm720_vm0, %v3483_v33  ;;  %732 = vst.msk [vmem:[#allocation4 + $0x58] sm:$0xff] %vm720_vm0, %v3483_v33 }
  0x32   : > { %733 = vst.msk [vmem:[#allocation4 + $0x60] sm:$0xff] %vm720_vm0, %v3483_v33  ;;  %734 = vst.msk [vmem:[#allocation4 + $0x68] sm:$0xff] %vm720_vm0, %v3483_v33 }
  0x33   : > { %735 = vst.msk [vmem:[#allocation4 + $0x70] sm:$0xff] %vm720_vm0, %v3483_v33  ;;  %736 = vst.msk [vmem:[#allocation4 + $0x78] sm:$0xff] %vm720_vm0, %v3483_v33 }
  0x34   : > { %737 = vst.msk [vmem:[#allocation4 + $0x80] sm:$0xff] %vm720_vm0, %v3483_v33  ;;  %738 = vst.msk [vmem:[#allocation4 + $0x88] sm:$0xff] %vm720_vm0, %v3483_v33 }
  0x35   : > { %739 = vst.msk [vmem:[#allocation4 + $0x90] sm:$0xff] %vm720_vm0, %v3483_v33  ;;  %740 = vst.msk [vmem:[#allocation4 + $0x98] sm:$0xff] %vm720_vm0, %v3483_v33 }
  0x36   : > { %741 = vst.msk [vmem:[#allocation4 + $0xa0] sm:$0xff] %vm720_vm0, %v3483_v33  ;;  %742 = vst.msk [vmem:[#allocation4 + $0xa8] sm:$0xff] %vm720_vm0, %v3483_v33 }
  0x37   : > { %743 = vst.msk [vmem:[#allocation4 + $0xb0] sm:$0xff] %vm720_vm0, %v3483_v33  ;;  %744 = vst.msk [vmem:[#allocation4 + $0xb8] sm:$0xff] %vm720_vm0, %v3483_v33 }
  0x38   : > { %745 = vst.msk [vmem:[#allocation4 + $0xc0] sm:$0xff] %vm720_vm0, %v3483_v33  ;;  %746 = vst.msk [vmem:[#allocation4 + $0xc8] sm:$0xff] %vm720_vm0, %v3483_v33 }
  0x39   : > { %747 = vst.msk [vmem:[#allocation4 + $0xd0] sm:$0xff] %vm720_vm0, %v3483_v33  ;;  %748 = vst.msk [vmem:[#allocation4 + $0xd8] sm:$0xff] %vm720_vm0, %v3483_v33 }
  0x3a   : > { %749 = vst.msk [vmem:[#allocation4 + $0xe0] sm:$0xff] %vm720_vm0, %v3483_v33  ;;  %750 = vst.msk [vmem:[#allocation4 + $0xe8] sm:$0xff] %vm720_vm0, %v3483_v33 }
  0x3b   : > { %751 = vst.msk [vmem:[#allocation4 + $0xf0] sm:$0xff] %vm720_vm0, %v3483_v33  ;;  %752 = vst.msk [vmem:[#allocation4 + $0xf8] sm:$0xff] %vm720_vm0, %v3483_v33 }
  0x3c PF: > { %v3732_v34 = vld [vmem:[#allocation2 + $0x80] sm:$0xff]  ;;  %v3734_v35 = vld [vmem:[#allocation2 + $0x88] sm:$0xff]  ;;  %v3742_v39 = vld [vmem:[#allocation2 + $0x90] sm:$0xff]  ;;  %p2641_p6 = scmp.eq.s32.totalorder %s3472_s17, 4 }
  0x3d   : > { %v3736_v36 = vld [vmem:[#allocation2] sm:$0xff]  ;;  %v926_v37 = vpack.c.bf16 %v3734_v35, %v3732_v34  ;;  %v3740_v38 = vld [vmem:[#allocation2 + $0x8] sm:$0xff]  ;;  %v3744_v40 = vld [vmem:[#allocation2 + $0x98] sm:$0xff] }
  0x3e   : > { %v918_v41 = vpack.c.bf16 %v3740_v38, %v3736_v36  ;;  %v927_v42 = vpack.c.bf16 %v3744_v40, %v3742_v39  ;;  %v3750_v43 = vld [vmem:[#allocation2 + $0x10] sm:$0xff]  ;;  %v3752_v44 = vld [vmem:[#allocation2 + $0x18] sm:$0xff]  ;;  %v3754_v45 = vld [vmem:[#allocation2 + $0xa0] sm:$0xff] }
  0x3f   : > { %3073 = vmatprep.subr.bf16.mxu0 %v926_v37  ;;  %v3756_v46 = vld [vmem:[#allocation2 + $0xa8] sm:$0xff]  ;;  %3319 = vmatprep.subr.bf16.mxu1 %v926_v37  ;;  %v919_v47 = vpack.c.bf16 %v3752_v44, %v3750_v43  ;;  %v3762_v49 = vld [vmem:[#allocation2 + $0x20] sm:$0xff]  ;;  %v3766_v51 = vld [vmem:[#allocation2 + $0xb0] sm:$0xff] }
  0x40   : > { %3074 = vmatpush3.bf16.msra.mxu0 %v918_v41  ;;  %3327 = vmatpush3.bf16.msra.mxu1 %v918_v41  ;;  %v928_v48 = vpack.c.bf16 %v3756_v46, %v3754_v45  ;;  %v3764_v50 = vld [vmem:[#allocation2 + $0x28] sm:$0xff]  ;;  %v3768_v52 = vld [vmem:[#allocation2 + $0xb8] sm:$0xff]  ;;  %v3774_v55 = vld [vmem:[#allocation2 + $0x30] sm:$0xff] }
  0x41   : > { %3075 = vmatprep.subr.bf16.mxu0 %v927_v42  ;;  %3320 = vmatprep.subr.bf16.mxu1 %v927_v42  ;;  %v920_v53 = vpack.c.bf16 %v3764_v50, %v3762_v49  ;;  %v929_v54 = vpack.c.bf16 %v3768_v52, %v3766_v51  ;;  %v3776_v56 = vld [vmem:[#allocation2 + $0x38] sm:$0xff]  ;;  %v3778_v57 = vld [vmem:[#allocation2 + $0xc0] sm:$0xff]  ;;  %v3780_v58 = vld [vmem:[#allocation2 + $0xc8] sm:$0xff] }
  0x42   : > { %v3366_v59 = vld [vmem:[%s4530_s1 + $0x4] ss:$8 sps:$4 sm:$0xff]   ;;  %v921_v60 = vpack.c.bf16 %v3776_v56, %v3774_v55  ;;  %v930_v62 = vpack.c.bf16 %v3780_v58, %v3778_v57  ;;  %v3791_v63 = vld [vmem:[#allocation2 + $0x48] sm:$0xff]  ;;  %v3793_v0 = vld [vmem:[#allocation2 + $0xd0] sm:$0xff] }
  0x43   : > { %v3787_v61 = vld [vmem:[#allocation2 + $0x40] sm:$0xff]  ;;  %1126 = vmatprep.mubr.bf16.mxu0 %v3366_v59  ;;  %v3795_v1 = vld [vmem:[#allocation2 + $0xd8] sm:$0xff]  ;;  %v3799_v3 = vld [vmem:[#allocation2 + $0x50] sm:$0xff] }
  0x44   : > { %3076 = vmatpush3.bf16.msra.mxu0 %v919_v47  ;;  %3328 = vmatpush3.bf16.msra.mxu1 %v919_v47  ;;  %v922_v2 = vpack.c.bf16 %v3791_v63, %v3787_v61  ;;  %v931_v4 = vpack.c.bf16 %v3795_v1, %v3793_v0  ;;  %v3803_v5 = vld [vmem:[#allocation2 + $0x58] sm:$0xff]  ;;  %v3805_v6 = vld [vmem:[#allocation2 + $0xe0] sm:$0xff]  ;;  %v3807_v7 = vld [vmem:[#allocation2 + $0xe8] sm:$0xff] }
  0x45   : > { %3077 = vmatprep.subr.bf16.mxu0 %v928_v48  ;;  %3321 = vmatprep.subr.bf16.mxu1 %v928_v48  ;;  %v3809_v8 = vld [vmem:[#allocation2 + $0x60] sm:$0xff]  ;;  %v923_v9 = vpack.c.bf16 %v3803_v5, %v3799_v3  ;;  %v3813_v10 = vld [vmem:[#allocation2 + $0x68] sm:$0xff]  ;;  %v932_v11 = vpack.c.bf16 %v3807_v7, %v3805_v6  ;;  %v3817_v12 = vld [vmem:[#allocation2 + $0xf0] sm:$0xff] }
  0x46   : > { %v3819_v13 = vld [vmem:[#allocation2 + $0xf8] sm:$0xff]  ;;  %v924_v15 = vpack.c.bf16 %v3813_v10, %v3809_v8  ;;  %v3826_v16 = vld [vmem:[#allocation2 + $0x70] sm:$0xff] }
  0x47   : > { %v3390_v14 = vld [vmem:[%s4530_s1 + $0x84] ss:$8 sps:$4 sm:$0xff]   ;;  %v933_v17 = vpack.c.bf16 %v3819_v13, %v3817_v12  ;;  %v3364_v20 = vld [vmem:[%s4530_s1] ss:$8 sps:$4 sm:$0xff]   ;;  %v3367_v21 = vld [vmem:[%s4530_s1 + $0x14] ss:$8 sps:$4 sm:$0xff]  }
  0x48   : > { %3078 = vmatpush3.bf16.msra.mxu0 %v920_v53  ;;  %3329 = vmatpush3.bf16.msra.mxu1 %v920_v53  ;;  %v3830_v18 = vld [vmem:[#allocation2 + $0x78] sm:$0xff]  ;;  %v3391_v23 = vld [vmem:[%s4530_s1 + $0x94] ss:$8 sps:$4 sm:$0xff]   ;;  %v3369_v27 = vld [vmem:[%s4530_s1 + $0x10] ss:$8 sps:$4 sm:$0xff]  }
  0x49   : > { %3079 = vmatprep.subr.bf16.mxu0 %v929_v54  ;;  %3322 = vmatprep.subr.bf16.mxu1 %v929_v54  ;;  %v925_v19 = vpack.c.bf16 %v3830_v18, %v3826_v16  ;;  %v3388_v22 = vld [vmem:[%s4530_s1 + $0x80] ss:$8 sps:$4 sm:$0xff]   ;;  %v3414_v24 = vld [vmem:[%s3580_s29 + $0x4] ss:$8 sps:$4 sm:$0xff]   ;;  %v3417_v26 = vld [vmem:[%s3580_s29 + $0x14] ss:$8 sps:$4 sm:$0xff]  }
  0x4a   : > { %1190 = vmatprep.mubr.bf16.mxu1 %v3390_v14  ;;  %v3412_v25 = vld [vmem:[%s3580_s29] ss:$8 sps:$4 sm:$0xff]   ;;  %v3370_v28 = vld [vmem:[%s4530_s1 + $0x24] ss:$8 sps:$4 sm:$0xff]   ;;  %v3415_v29 = vld [vmem:[%s3580_s29 + $0x10] ss:$8 sps:$4 sm:$0xff]  }
  0x4b   : > { %v3393_v30 = vld [vmem:[%s4530_s1 + $0x90] ss:$8 sps:$4 sm:$0xff]   ;;  %v3394_v31 = vld [vmem:[%s4530_s1 + $0xa4] ss:$8 sps:$4 sm:$0xff]   ;;  %v3418_v32 = vld [vmem:[%s3580_s29 + $0x20] ss:$8 sps:$4 sm:$0xff]  }
  0x4c   : > { %3080 = vmatpush3.bf16.msra.mxu0 %v921_v60  ;;  %3330 = vmatpush3.bf16.msra.mxu1 %v921_v60  ;;  %v3420_v33 = vld [vmem:[%s3580_s29 + $0x24] ss:$8 sps:$4 sm:$0xff]   ;;  %v3423_v37 = vld [vmem:[%s3580_s29 + $0x34] ss:$8 sps:$4 sm:$0xff]   ;;  %v3421_v41 = vld [vmem:[%s3580_s29 + $0x30] ss:$8 sps:$4 sm:$0xff]  }
  0x4d   : > { %3081 = vmatprep.subr.bf16.mxu0 %v930_v62  ;;  %3323 = vmatprep.subr.bf16.mxu1 %v930_v62  ;;  %v3372_v42 = vld [vmem:[%s4530_s1 + $0x20] ss:$8 sps:$4 sm:$0xff]   ;;  %v3373_v48 = vld [vmem:[%s4530_s1 + $0x34] ss:$8 sps:$4 sm:$0xff]   ;;  %v3426_v54 = vld [vmem:[%s3580_s29 + $0x44] ss:$8 sps:$4 sm:$0xff]  }
  0x4e   : > { %v3396_v47 = vld [vmem:[%s4530_s1 + $0xa0] ss:$8 sps:$4 sm:$0xff]   ;;  %v3397_v53 = vld [vmem:[%s4530_s1 + $0xb4] ss:$8 sps:$4 sm:$0xff]   ;;  %v3427_v62 = vld [vmem:[%s3580_s29 + $0x50] ss:$8 sps:$4 sm:$0xff]  }
  0x4f   : > { %v3424_v59 = vld [vmem:[%s3580_s29 + $0x40] ss:$8 sps:$4 sm:$0xff]   ;;  %v3429_v60 = vld [vmem:[%s3580_s29 + $0x54] ss:$8 sps:$4 sm:$0xff]   ;;  %v3432_v14 = vld [vmem:[%s3580_s29 + $0x64] ss:$8 sps:$4 sm:$0xff]  }
  0x50   : > { %3082 = vmatpush3.bf16.msra.mxu0 %v922_v2  ;;  %3331 = vmatpush3.bf16.msra.mxu1 %v922_v2  ;;  %v3375_v2 = vld [vmem:[%s4530_s1 + $0x30] ss:$8 sps:$4 sm:$0xff]  }
  0x51   : > { %3083 = vmatprep.subr.bf16.mxu0 %v931_v4  ;;  %3324 = vmatprep.subr.bf16.mxu1 %v931_v4  ;;  %v3399_v4 = vld [vmem:[%s4530_s1 + $0xb0] ss:$8 sps:$4 sm:$0xff]  }
  0x54   : > { %3084 = vmatpush3.bf16.msra.mxu0 %v923_v9  ;;  %3332 = vmatpush3.bf16.msra.mxu1 %v923_v9  ;;  %v3376_v9 = vld [vmem:[%s4530_s1 + $0x44] ss:$8 sps:$4 sm:$0xff]  }
  0x55   : > { %3085 = vmatprep.subr.bf16.mxu0 %v932_v11  ;;  %3325 = vmatprep.subr.bf16.mxu1 %v932_v11  ;;  %v3400_v11 = vld [vmem:[%s4530_s1 + $0xc4] ss:$8 sps:$4 sm:$0xff]  }
  0x58   : > { %3086 = vmatpush3.bf16.msra.mxu0 %v924_v15  ;;  %3333 = vmatpush3.bf16.msra.mxu1 %v924_v15  ;;  %v3430_v15 = vld [vmem:[%s3580_s29 + $0x60] ss:$8 sps:$4 sm:$0xff]  }
  0x59   : > { %3087 = vmatprep.subr.bf16.mxu0 %v933_v17  ;;  %3326 = vmatprep.subr.bf16.mxu1 %v933_v17  ;;  %v3378_v17 = vld [vmem:[%s4530_s1 + $0x40] ss:$8 sps:$4 sm:$0xff]  }
  0x5c   : > { %3088 = vmatpush3.bf16.msra.mxu0 %v925_v19  ;;  %3334 = vmatpush3.bf16.msra.mxu1 %v925_v19  ;;  %v3402_v19 = vld [vmem:[%s4530_s1 + $0xc0] ss:$8 sps:$4 sm:$0xff]  }
  0x5d   : > { %1574 = vmatprep.subr.bf16.mxu1 %v3414_v24  ;;  %v3382_v24 = vld [vmem:[%s4530_s1 + $0x64] ss:$8 sps:$4 sm:$0xff]  }
  0x5f   : > { %1127 = vmatmul.mubr.bf16.vlgmr.msra.gmra.mrb[0].mxu0 %v3364_v20  ;;  %1191 = vmatmul.mubr.bf16.vlgmr.msra.gmra.mrb[0].mxu1 %v3388_v22  ;;  %v3379_v20 = vld [vmem:[%s4530_s1 + $0x54] ss:$8 sps:$4 sm:$0xff]   ;;  %v3381_v22 = vld [vmem:[%s4530_s1 + $0x50] ss:$8 sps:$4 sm:$0xff]  }
  0x60   : > { %1134 = vmatprep.mubr.bf16.mxu0 %v3367_v21  ;;  %1198 = vmatprep.mubr.bf16.mxu1 %v3391_v23  ;;  %v3403_v21 = vld [vmem:[%s4530_s1 + $0xd4] ss:$8 sps:$4 sm:$0xff]   ;;  %v3405_v23 = vld [vmem:[%s4530_s1 + $0xd0] ss:$8 sps:$4 sm:$0xff]  }
  0x61   : > { %1575 = vmatpush1.bf16.msra.mxu1 %v3412_v25  ;;  %v3406_v25 = vld [vmem:[%s4530_s1 + $0xe4] ss:$8 sps:$4 sm:$0xff]  }
  0x62   : > { %1576 = vmatprep.subr.bf16.mxu1 %v3417_v26  ;;  %v3384_v26 = vld [vmem:[%s4530_s1 + $0x60] ss:$8 sps:$4 sm:$0xff]  }
  0x65   : > { %1577 = vmatpush1.bf16.msra.mxu1 %v3415_v29  ;;  %v3409_v29 = vld [vmem:[%s4530_s1 + $0xf4] ss:$8 sps:$4 sm:$0xff]  }
  0x66   : > { %1578 = vmatprep.subr.bf16.mxu1 %v3420_v33  ;;  %v3433_v33 = vld [vmem:[%s3580_s29 + $0x70] ss:$8 sps:$4 sm:$0xff]  }
  0x67   : > { %1135 = vmatmul.mubr.bf16.gmra.mrb[4].mxu0 %v3369_v27  ;;  %1199 = vmatmul.mubr.bf16.gmra.mrb[4].mxu1 %v3393_v30  ;;  %v3408_v27 = vld [vmem:[%s4530_s1 + $0xe0] ss:$8 sps:$4 sm:$0xff]   ;;  %v3387_v30 = vld [vmem:[%s4530_s1 + $0x70] ss:$8 sps:$4 sm:$0xff]  }
  0x68   : > { %1142 = vmatprep.mubr.bf16.mxu0 %v3370_v28  ;;  %1206 = vmatprep.mubr.bf16.mxu1 %v3394_v31  ;;  %v3385_v28 = vld [vmem:[%s4530_s1 + $0x74] ss:$8 sps:$4 sm:$0xff]   ;;  %v3411_v31 = vld [vmem:[%s4530_s1 + $0xf0] ss:$8 sps:$4 sm:$0xff]  }
  0x69   : > { %1579 = vmatpush1.bf16.msra.mxu1 %v3418_v32  ;;  %v3435_v32 = vld [vmem:[%s3580_s29 + $0x74] ss:$8 sps:$4 sm:$0xff]  }
  0x6a   : > { %1580 = vmatprep.subr.bf16.mxu1 %v3423_v37  ;;  %v3484_v37 = vmov 0  }
  0x6b   : > { %3362 = vset.pattern.permute.xlu0 %v3484_v37  ;;  %3363 = vset.pattern.permute.xlu1 %v3484_v37 }
  0x6d   : > { %1581 = vmatpush1.bf16.msra.mxu1 %v3421_v41  ;;  %v3065_v41 = vld [vmem:[%s3575_s26 + $0x40] sm:$0xff]  }
  0x6e   : > { %1582 = vmatprep.subr.bf16.mxu1 %v3426_v54 }
  0x6f   : > { %1143 = vmatmul.mubr.bf16.gmra.mrb[8].mxu0 %v3372_v42  ;;  %1207 = vmatmul.mubr.bf16.gmra.mrb[8].mxu1 %v3396_v47  ;;  %v2995_v47 = vld [vmem:[%s3575_s26] sm:$0xff]  }
  0x70   : > { %1150 = vmatprep.mubr.bf16.mxu0 %v3373_v48  ;;  %1214 = vmatprep.mubr.bf16.mxu1 %v3397_v53 }
  0x71   : > { %1583 = vmatpush1.bf16.msra.mxu1 %v3424_v59 }
  0x72   : > { %1584 = vmatprep.subr.bf16.mxu1 %v3429_v60 }
  0x75   : > { %1585 = vmatpush1.bf16.msra.mxu1 %v3427_v62 }
  0x76   : > { %1586 = vmatprep.subr.bf16.mxu1 %v3432_v14  ;;  %v2997_v14 = vunpack.c.h.bf16 %v2995_v47 }
  0x77   : > { %1151 = vmatmul.mubr.bf16.gmra.mrb[12].mxu0 %v3375_v2  ;;  %1215 = vmatmul.mubr.bf16.gmra.mrb[12].mxu1 %v3399_v4  ;;  %v3028_v2 = vunpack.c.l.bf16 %v3065_v41 }
  0x78   : > { %1158 = vmatprep.mubr.bf16.mxu0 %v3376_v9  ;;  %1222 = vmatprep.mubr.bf16.mxu1 %v3400_v11  ;;  %v2996_v9 = vunpack.c.l.bf16 %v2995_v47 }
  0x79   : > { %1587 = vmatpush1.bf16.msra.mxu1 %v3430_v15 }
  0x7a   : > { %1588 = vmatprep.subr.bf16.mxu1 %v3435_v32 }
  0x7d   : > { %1589 = vmatpush1.bf16.msra.mxu1 %v3433_v33  ;;  %v3058_v33 = vld [vmem:[%s3575_s26 + $0x8] sm:$0xff]  }
  0x7f   : > { %1159 = vmatmul.mubr.bf16.gmra.mrb[16].mxu0 %v3378_v17  ;;  %1223 = vmatmul.mubr.bf16.gmra.mrb[16].mxu1 %v3402_v19  ;;  %v3029_v17 = vunpack.c.h.bf16 %v3065_v41 }
  0x80   : > { %1166 = vmatprep.mubr.bf16.mxu0 %v3379_v20  ;;  %1230 = vmatprep.mubr.bf16.mxu1 %v3403_v21 }
  0x87   : > { %1167 = vmatmul.mubr.bf16.gmra.mrb[20].mxu0 %v3381_v22  ;;  %1231 = vmatmul.mubr.bf16.gmra.mrb[20].mxu1 %v3405_v23  ;;  %v3436_v23 = vld [vmem:[%s3590_s16 + $0x40] sm:$0xff]  }
  0x88   : > { %1174 = vmatprep.mubr.bf16.mxu0 %v3382_v24  ;;  %1238 = vmatprep.mubr.bf16.mxu1 %v3406_v25  ;;  %v3437_v24 = vld [vmem:[%s3590_s16] sm:$0xff]   ;;  %v3438_v25 = vld [vmem:[%s3590_s16 + $0x48] sm:$0xff]  }
  0x89   : > { %3185 = vmatprep.subr.bf16.mxu0 %v3436_v23 }
  0x8a   : > { %3186 = vmatpush3.bf16.msra.mxu0 %v3437_v24 }
  0x8b   : > { %3187 = vmatprep.subr.bf16.mxu0 %v3438_v25 }
  0x8f   : > { %1175 = vmatmul.mubr.bf16.gmra.mrb[24].mxu0 %v3384_v26  ;;  %1239 = vmatmul.mubr.bf16.gmra.mrb[24].mxu1 %v3408_v27 }
  0x90   : > { %1182 = vmatprep.mubr.bf16.mxu0 %v3385_v28  ;;  %1246 = vmatprep.mubr.bf16.mxu1 %v3409_v29  ;;  %v3066_v29 = vld [vmem:[%s3575_s26 + $0x48] sm:$0xff]  }
  0x91   : > { %v3032_v47 = vunpack.c.l.bf16 %v3066_v29 }
  0x97   : > { %1183 = vmatmul.mubr.bf16.gmra.mrb[28].mxu0 %v3387_v30  ;;  %1247 = vmatmul.mubr.bf16.gmra.mrb[28].mxu1 %v3411_v31  ;;  %v3439_v30 = vld [vmem:[%s3590_s16 + $0x8] sm:$0xff]  }
  0x98   : > { %1606 = vmatprep.mubr.bf16.mxu1 %v3484_v37  ;;  %3188 = vmatpush3.bf16.msra.mxu0 %v3439_v30 }
 0x132   : > { %v3089_v42 = vpop.f32.mrb[0].mxu0  ;;  %v3137_v48 = vpop.f32.mrb[0].mxu1 }
 0x133   : > { %v3090_v53 = vpop.f32.mrb[1].mxu0  ;;  %v3138_v54 = vpop.f32.mrb[1].mxu1 }
 0x134   : > { %v3091_v59 = vadd.f32 %v3090_v53, %v3089_v42  ;;  %v3092_v60 = vpop.f32.mrb[2].mxu0  ;;  %v3139_v62 = vadd.f32 %v3138_v54, %v3137_v48  ;;  %v3140_v4 = vpop.f32.mrb[2].mxu1  ;;  %v3440_v48 = vld [vmem:[%s3590_s16 + $0x50] sm:$0xff]  }
 0x135   : > { %v3093_v11 = vpop.f32.mrb[3].mxu0  ;;  %v3141_v15 = vpop.f32.mrb[3].mxu1  ;;  %3189 = vmatprep.subr.bf16.mxu0 %v3440_v48 }
 0x136   : > { %v1255_v19 = vadd.f32 %v3091_v59, %v3736_v36  ;;  %v3094_v20 = vadd.f32 %v3093_v11, %v3092_v60  ;;  %v1271_v21 = vadd.f32 %v3139_v62, %v3732_v34  ;;  %v3142_v22 = vadd.f32 %v3141_v15, %v3140_v4  ;;  %v3441_v15 = vld [vmem:[%s3590_s16 + $0x10] sm:$0xff]  }
 0x137   : > { %3190 = vmatpush3.bf16.msra.mxu0 %v3441_v15 }
 0x138   : > { %v1256_v26 = vadd.f32 %v3094_v20, %v3740_v38  ;;  %v3951_v27 = vadd.f32 %v3028_v2, %v1271_v21  ;;  %v1272_v28 = vadd.f32 %v3142_v22, %v3734_v35  ;;  %v1418_v36 = vadd.f32 %v2996_v9, %v1255_v19  ;;  %v3442_v22 = vld [vmem:[%s3590_s16 + $0x58] sm:$0xff]  }
 0x139   : > { %v3000_v2 = vunpack.c.l.bf16 %v3058_v33  ;;  %v3001_v9 = vunpack.c.h.bf16 %v3058_v33  ;;  %3191 = vmatprep.subr.bf16.mxu0 %v3442_v22  ;;  %v3068_v22 = vld [vmem:[%s3575_s26 + $0x58] sm:$0xff]  }
 0x13a   : > { %v1419_v31 = vadd.f32 %v2997_v14, %v1256_v26  ;;  %v3095_v32 = vpop.f32.mrb[4].mxu0  ;;  %v3957_v34 = vadd.f32 %v3029_v17, %v1272_v28  ;;  %v3143_v41 = vpop.f32.mrb[4].mxu1  ;;  %v3033_v14 = vunpack.c.h.bf16 %v3066_v29  ;;  %v3067_v26 = vld [vmem:[%s3575_s26 + $0x50] sm:$0xff]  }
 0x13b   : > { %v3096_v42 = vpop.f32.mrb[5].mxu0  ;;  %v3144_v38 = vpop.f32.mrb[5].mxu1 }
 0x13c   : > { %v1450_v53 = vpack.c.bf16 %v1419_v31, %v1418_v36  ;;  %v3097_v54 = vadd.f32 %v3096_v42, %v3095_v32  ;;  %v3098_v35 = vpop.f32.mrb[6].mxu0  ;;  %v3145_v59 = vadd.f32 %v3144_v38, %v3143_v41  ;;  %v3146_v60 = vpop.f32.mrb[6].mxu1  ;;  %v1458_v62 = vpack.c.bf16 %v3957_v34, %v3951_v27  ;;  %v3059_v36 = vld [vmem:[%s3575_s26 + $0x10] sm:$0xff]   ;;  %v3444_v41 = vld [vmem:[%s3590_s16 + $0x60] sm:$0xff]  }
 0x13d   : > { %v3099_v4 = vpop.f32.mrb[7].mxu0  ;;  %v3147_v11 = vpop.f32.mrb[7].mxu1  ;;  %v2160_v27 = vld [vmem:[#allocation4 + $0x8] sm:$0xff]  ;;  %v2162_v34 = vld [vmem:[#allocation4 + $0x18] sm:$0xff] }
 0x13e   : > { %v1257_v17 = vadd.f32 %v3097_v54, %v3750_v43  ;;  %v3100_v19 = vadd.f32 %v3099_v4, %v3098_v35  ;;  %1607 = vmatmul.mubr.bf16.vlgmr.msra.gmra.mrb[32].mxu1 %v1450_v53  ;;  %v1273_v20 = vadd.f32 %v3145_v59, %v3742_v39  ;;  %v3148_v21 = vadd.f32 %v3147_v11, %v3146_v60  ;;  %v3443_v43 = vld [vmem:[%s3590_s16 + $0x18] sm:$0xff]   ;;  %v3445_v4 = vld [vmem:[%s3590_s16 + $0x20] sm:$0xff]  }
 0x13f   : > { %1616 = vmatprep.mubr.bf16.mxu1 %v3484_v37  ;;  %v3004_v54 = vunpack.c.l.bf16 %v3059_v36  ;;  %v3005_v59 = vunpack.c.h.bf16 %v3059_v36  ;;  %3192 = vmatpush3.bf16.msra.mxu0 %v3443_v43  ;;  %v3060_v43 = vld [vmem:[%s3575_s26 + $0x18] sm:$0xff]   ;;  %v3448_v36 = vld [vmem:[%s3590_s16 + $0x70] sm:$0xff]  }
 0x140   : > { %v1258_v23 = vadd.f32 %v3100_v19, %v3752_v44  ;;  %v3968_v24 = vadd.f32 %v3032_v47, %v1273_v20  ;;  %v1274_v25 = vadd.f32 %v3148_v21, %v3744_v40  ;;  %v1420_v28 = vadd.f32 %v3000_v2, %v1257_v17  ;;  %v3446_v17 = vld [vmem:[%s3590_s16 + $0x68] sm:$0xff]   ;;  %3193 = vmatprep.subr.bf16.mxu0 %v3444_v41 }
 0x141   : > { %v3036_v44 = vunpack.c.l.bf16 %v3067_v26  ;;  %v3037_v2 = vunpack.c.h.bf16 %v3067_v26 }
 0x142   : > { %v1421_v29 = vadd.f32 %v3001_v9, %v1258_v23  ;;  %v3101_v30 = vpop.f32.mrb[8].mxu0  ;;  %v3974_v39 = vadd.f32 %v3033_v14, %v1274_v25  ;;  %v3149_v31 = vpop.f32.mrb[8].mxu1 }
 0x143   : > { %v3102_v32 = vpop.f32.mrb[9].mxu0  ;;  %v3150_v33 = vpop.f32.mrb[9].mxu1  ;;  %3194 = vmatpush3.bf16.msra.mxu0 %v3445_v4 }
 0x144   : > { %v3103_v42 = vadd.f32 %v3102_v32, %v3101_v30  ;;  %v3104_v38 = vpop.f32.mrb[10].mxu0  ;;  %v1451_v47 = vpack.c.bf16 %v1421_v29, %v1420_v28  ;;  %v3151_v40 = vadd.f32 %v3150_v33, %v3149_v31  ;;  %v3152_v48 = vpop.f32.mrb[10].mxu1  ;;  %v1459_v53 = vpack.c.bf16 %v3974_v39, %v3968_v24  ;;  %3195 = vmatprep.subr.bf16.mxu0 %v3446_v17  ;;  %v2164_v24 = vld [vmem:[#allocation4 + $0x28] sm:$0xff]  ;;  %v2165_v39 = vld [vmem:[#allocation4 + $0x30] sm:$0xff] }
 0x145   : > { %v3105_v35 = vpop.f32.mrb[11].mxu0  ;;  %v3153_v60 = vpop.f32.mrb[11].mxu1 }
 0x146   : > { %v1259_v9 = vadd.f32 %v3103_v42, %v3762_v49  ;;  %v3106_v11 = vadd.f32 %v3105_v35, %v3104_v38  ;;  %1617 = vmatmul.mubr.bf16.gmra.mrb[36].mxu1 %v1451_v47  ;;  %v1275_v14 = vadd.f32 %v3151_v40, %v3754_v45  ;;  %v3154_v15 = vadd.f32 %v3153_v60, %v3152_v48  ;;  %v3447_v49 = vld [vmem:[%s3590_s16 + $0x28] sm:$0xff]  }
 0x147   : > { %1626 = vmatprep.mubr.bf16.mxu1 %v3484_v37  ;;  %v3008_v42 = vunpack.c.l.bf16 %v3060_v43  ;;  %v3009_v47 = vunpack.c.h.bf16 %v3060_v43  ;;  %v3041_v48 = vunpack.c.h.bf16 %v3068_v22  ;;  %3196 = vmatpush3.bf16.msra.mxu0 %v3447_v49 }
 0x148   : > { %v1260_v19 = vadd.f32 %v3106_v11, %v3764_v50  ;;  %v3985_v20 = vadd.f32 %v3036_v44, %v1275_v14  ;;  %v1276_v21 = vadd.f32 %v3154_v15, %v3756_v46  ;;  %v1422_v23 = vadd.f32 %v3004_v54, %v1259_v9  ;;  %v3449_v54 = vld [vmem:[%s3590_s16 + $0x30] sm:$0xff]   ;;  %3197 = vmatprep.subr.bf16.mxu0 %v3448_v36  ;;  %v3069_v14 = vld [vmem:[%s3575_s26 + $0x60] sm:$0xff]  }
 0x149   : > { %v3040_v50 = vunpack.c.l.bf16 %v3068_v22 }
 0x14a   : > { %v1423_v25 = vadd.f32 %v3005_v59, %v1260_v19  ;;  %v3107_v26 = vpop.f32.mrb[12].mxu0  ;;  %v3991_v45 = vadd.f32 %v3037_v2, %v1276_v21  ;;  %v3155_v28 = vpop.f32.mrb[12].mxu1 }
 0x14b   : > { %v3108_v29 = vpop.f32.mrb[13].mxu0  ;;  %v3156_v30 = vpop.f32.mrb[13].mxu1  ;;  %3198 = vmatpush3.bf16.msra.mxu0 %v3449_v54 }
 0x14c   : > { %v3109_v31 = vadd.f32 %v3108_v29, %v3107_v26  ;;  %v3110_v32 = vpop.f32.mrb[14].mxu0  ;;  %v1452_v33 = vpack.c.bf16 %v1423_v25, %v1422_v23  ;;  %v3157_v46 = vadd.f32 %v3156_v30, %v3155_v28  ;;  %v3158_v44 = vpop.f32.mrb[14].mxu1  ;;  %v1460_v41 = vpack.c.bf16 %v3991_v45, %v3985_v20  ;;  %v2166_v20 = vld [vmem:[#allocation4 + $0x38] sm:$0xff]  ;;  %v2167_v45 = vld [vmem:[#allocation4 + $0x40] sm:$0xff] }
 0x14d   : > { %v3111_v38 = vpop.f32.mrb[15].mxu0  ;;  %v3159_v40 = vpop.f32.mrb[15].mxu1  ;;  %v3044_v23 = vunpack.c.l.bf16 %v3069_v14 }
 0x14e   : > { %v1261_v35 = vadd.f32 %v3109_v31, %v3774_v55  ;;  %v3112_v59 = vadd.f32 %v3111_v38, %v3110_v32  ;;  %1627 = vmatmul.mubr.bf16.gmra.mrb[40].mxu1 %v1452_v33  ;;  %v1277_v60 = vadd.f32 %v3157_v46, %v3766_v51  ;;  %v3160_v2 = vadd.f32 %v3159_v40, %v3158_v44  ;;  %v3061_v55 = vld [vmem:[%s3575_s26 + $0x20] sm:$0xff]   ;;  %v3070_v40 = vld [vmem:[%s3575_s26 + $0x68] sm:$0xff]  }
 0x14f   : > { %1636 = vmatprep.mubr.bf16.mxu1 %v3484_v37  ;;  %v3012_v29 = vunpack.c.l.bf16 %v3061_v55  ;;  %v3045_v31 = vunpack.c.h.bf16 %v3069_v14 }
 0x150   : > { %v1262_v4 = vadd.f32 %v3112_v59, %v3776_v56  ;;  %v4001_v9 = vadd.f32 %v3040_v50, %v1277_v60  ;;  %v1278_v11 = vadd.f32 %v3160_v2, %v3768_v52  ;;  %v1424_v15 = vadd.f32 %v3008_v42, %v1261_v35  ;;  %v3062_v59 = vld [vmem:[%s3575_s26 + $0x28] sm:$0xff]  }
 0x151   : > { %v3013_v50 = vunpack.c.h.bf16 %v3061_v55 }
 0x152   : > { %v1425_v17 = vadd.f32 %v3009_v47, %v1262_v4  ;;  %v3113_v19 = vpop.f32.mrb[16].mxu0  ;;  %v4006_v21 = vadd.f32 %v3041_v48, %v1278_v11  ;;  %v3161_v22 = vpop.f32.mrb[16].mxu1 }
 0x153   : > { %v3114_v51 = vpop.f32.mrb[17].mxu0  ;;  %v3162_v49 = vpop.f32.mrb[17].mxu1 }
 0x154   : > { %v3115_v25 = vadd.f32 %v3114_v51, %v3113_v19  ;;  %v3116_v26 = vpop.f32.mrb[18].mxu0  ;;  %v1453_v43 = vpack.c.bf16 %v1425_v17, %v1424_v15  ;;  %v3163_v56 = vadd.f32 %v3162_v49, %v3161_v22  ;;  %v3164_v28 = vpop.f32.mrb[18].mxu1  ;;  %v1461_v52 = vpack.c.bf16 %v4006_v21, %v4001_v9  ;;  %v2169_v9 = vld [vmem:[#allocation4 + $0x50] sm:$0xff] }
 0x155   : > { %v3117_v30 = vpop.f32.mrb[19].mxu0  ;;  %v3165_v36 = vpop.f32.mrb[19].mxu1  ;;  %v3016_v19 = vunpack.c.l.bf16 %v3062_v59  ;;  %v3017_v22 = vunpack.c.h.bf16 %v3062_v59  ;;  %v3049_v49 = vunpack.c.h.bf16 %v3070_v40 }
 0x156   : > { %v1263_v32 = vadd.f32 %v3115_v25, %v3787_v61  ;;  %v3118_v33 = vadd.f32 %v3117_v30, %v3116_v26  ;;  %1637 = vmatmul.mubr.bf16.gmra.mrb[44].mxu1 %v1453_v43  ;;  %v1279_v46 = vadd.f32 %v3163_v56, %v3778_v57  ;;  %v3166_v44 = vadd.f32 %v3165_v36, %v3164_v28  ;;  %v3071_v30 = vld [vmem:[%s3575_s26 + $0x70] sm:$0xff]  }
 0x157   : > { %1646 = vmatprep.mubr.bf16.mxu1 %v3484_v37  ;;  %v3048_v57 = vunpack.c.l.bf16 %v3070_v40 }
 0x158   : > { %v1264_v42 = vadd.f32 %v3118_v33, %v3791_v63  ;;  %v4014_v38 = vadd.f32 %v3044_v23, %v1279_v46  ;;  %v1280_v47 = vadd.f32 %v3166_v44, %v3780_v58  ;;  %v1426_v48 = vadd.f32 %v3012_v29, %v1263_v32  ;;  %v3063_v32 = vld [vmem:[%s3575_s26 + $0x30] sm:$0xff]  }
 0x159   : > { %v3021_v59 = vunpack.c.h.bf16 %v3063_v32 }
 0x15a   : > { %v1427_v54 = vadd.f32 %v3013_v50, %v1264_v42  ;;  %v3119_v35 = vpop.f32.mrb[20].mxu0  ;;  %v4019_v60 = vadd.f32 %v3045_v31, %v1280_v47  ;;  %v3167_v61 = vpop.f32.mrb[20].mxu1 }
 0x15b   : > { %v3120_v2 = vpop.f32.mrb[21].mxu0  ;;  %v3168_v4 = vpop.f32.mrb[21].mxu1 }
 0x15c   : > { %v3121_v11 = vadd.f32 %v3120_v2, %v3119_v35  ;;  %v3122_v14 = vpop.f32.mrb[22].mxu0  ;;  %v1454_v15 = vpack.c.bf16 %v1427_v54, %v1426_v48  ;;  %v3169_v17 = vadd.f32 %v3168_v4, %v3167_v61  ;;  %v3170_v63 = vpop.f32.mrb[22].mxu1  ;;  %v1462_v58 = vpack.c.bf16 %v4019_v60, %v4014_v38  ;;  %v2171_v38 = vld [vmem:[#allocation4 + $0x60] sm:$0xff]  ;;  %v1482_v60 = vld [vmem:[%s3585_s13] sm:$0x3] }
 0x15d   : > { %v3123_v55 = vpop.f32.mrb[23].mxu0  ;;  %v3171_v51 = vpop.f32.mrb[23].mxu1  ;;  %v3020_v54 = vunpack.c.l.bf16 %v3063_v32  ;;  %v3053_v2 = vunpack.c.h.bf16 %v3071_v30 }
 0x15e   : > { %v1265_v23 = vadd.f32 %v3121_v11, %v3799_v3  ;;  %v3124_v25 = vadd.f32 %v3123_v55, %v3122_v14  ;;  %1647 = vmatmul.mubr.bf16.gmra.mrb[48].mxu1 %v1454_v15  ;;  %v1281_v26 = vadd.f32 %v3169_v17, %v3793_v0  ;;  %v3172_v43 = vadd.f32 %v3171_v51, %v3170_v63 }
 0x15f   : > { %1656 = vmatprep.mubr.bf16.mxu1 %v3484_v37  ;;  %v3052_v0 = vunpack.c.l.bf16 %v3071_v30 }
 0x160   : > { %v1266_v56 = vadd.f32 %v3124_v25, %v3803_v5  ;;  %v4027_v28 = vadd.f32 %v3048_v57, %v1281_v26  ;;  %v1282_v29 = vadd.f32 %v3172_v43, %v3795_v1  ;;  %v1428_v50 = vadd.f32 %v3016_v19, %v1265_v23  ;;  %v3072_v19 = vld [vmem:[%s3575_s26 + $0x78] sm:$0xff]  }
 0x161   : > { %v3056_v43 = vunpack.c.l.bf16 %v3072_v19 }
 0x162   : > { %v1429_v36 = vadd.f32 %v3017_v22, %v1266_v56  ;;  %v3125_v31 = vpop.f32.mrb[24].mxu0  ;;  %v4032_v33 = vadd.f32 %v3049_v49, %v1282_v29  ;;  %v3173_v3 = vpop.f32.mrb[24].mxu1  ;;  %v3064_v49 = vld [vmem:[%s3575_s26 + $0x38] sm:$0xff]  }
 0x163   : > { %v3126_v46 = vpop.f32.mrb[25].mxu0  ;;  %v3174_v44 = vpop.f32.mrb[25].mxu1  ;;  %v3025_v32 = vunpack.c.h.bf16 %v3064_v49 }
 0x164   : > { %v3127_v42 = vadd.f32 %v3126_v46, %v3125_v31  ;;  %v3128_v47 = vpop.f32.mrb[26].mxu0  ;;  %v1455_v40 = vpack.c.bf16 %v1429_v36, %v1428_v50  ;;  %v3175_v48 = vadd.f32 %v3174_v44, %v3173_v3  ;;  %v3176_v5 = vpop.f32.mrb[26].mxu1  ;;  %v1463_v1 = vpack.c.bf16 %v4032_v33, %v4027_v28  ;;  %v2172_v33 = vld [vmem:[#allocation4 + $0x68] sm:$0xff] }
 0x165   : > { %v3129_v35 = vpop.f32.mrb[27].mxu0  ;;  %v3177_v61 = vpop.f32.mrb[27].mxu1  ;;  %v3057_v3 = vunpack.c.h.bf16 %v3072_v19 }
 0x166   : > { %v1267_v4 = vadd.f32 %v3127_v42, %v3809_v8  ;;  %v3130_v57 = vadd.f32 %v3129_v35, %v3128_v47  ;;  %1657 = vmatmul.mubr.bf16.gmra.mrb[52].mxu1 %v1455_v40  ;;  %v1283_v11 = vadd.f32 %v3175_v48, %v3805_v6  ;;  %v3178_v14 = vadd.f32 %v3177_v61, %v3176_v5 }
 0x167   : > { %1666 = vmatprep.mubr.bf16.mxu1 %v3484_v37 }
 0x168   : > { %v1268_v15 = vadd.f32 %v3130_v57, %v3813_v10  ;;  %v1446_v17 = vadd.f32 %v3052_v0, %v1283_v11  ;;  %v1284_v63 = vadd.f32 %v3178_v14, %v3807_v7  ;;  %v1430_v55 = vadd.f32 %v3020_v54, %v1267_v4  ;;  %v2174_v57 = vld [vmem:[#allocation4 + $0x78] sm:$0xff]  ;;  %v2175_v11 = vld [vmem:[#allocation4 + $0x80] sm:$0xff] }
 0x169   : > { %v3024_v10 = vunpack.c.l.bf16 %v3064_v49 }
 0x16a   : > { %v1431_v22 = vadd.f32 %v3021_v59, %v1268_v15  ;;  %v3131_v51 = vpop.f32.mrb[28].mxu0  ;;  %v1447_v23 = vadd.f32 %v3053_v2, %v1284_v63  ;;  %v3179_v25 = vpop.f32.mrb[28].mxu1 }
 0x16b   : > { %v3132_v8 = vpop.f32.mrb[29].mxu0  ;;  %v3180_v26 = vpop.f32.mrb[29].mxu1 }
 0x16c   : > { %v3133_v56 = vadd.f32 %v3132_v8, %v3131_v51  ;;  %v3134_v6 = vpop.f32.mrb[30].mxu0  ;;  %v1456_v29 = vpack.c.bf16 %v1431_v22, %v1430_v55  ;;  %v3181_v30 = vadd.f32 %v3180_v26, %v3179_v25  ;;  %v3182_v50 = vpop.f32.mrb[30].mxu1  ;;  %v1464_v36 = vpack.c.bf16 %v1447_v23, %v1446_v17  ;;  %v2176_v22 = vld [vmem:[#allocation4 + $0x88] sm:$0xff]  ;;  %v2177_v51 = vld [vmem:[#allocation4 + $0x90] sm:$0xff] }
 0x16d   : > { %v3135_v31 = vpop.f32.mrb[31].mxu0  ;;  %v3183_v7 = vpop.f32.mrb[31].mxu1 }
 0x16e   : > { %v1269_v46 = vadd.f32 %v3133_v56, %v3826_v16  ;;  %v3136_v44 = vadd.f32 %v3135_v31, %v3134_v6  ;;  %1667 = vmatmul.mubr.bf16.gmra.mrb[56].mxu1 %v1456_v29  ;;  %v1285_v0 = vadd.f32 %v3181_v30, %v3817_v12  ;;  %v3184_v42 = vadd.f32 %v3183_v7, %v3182_v50  ;;  %v3450_v12 = vld [vmem:[%s3590_s16 + $0x78] sm:$0xff]   ;;  %v2159_v16 = vld [vmem:[#allocation4] sm:$0xff]  ;;  %v2178_v56 = vld [vmem:[#allocation4 + $0x98] sm:$0xff] }
 0x16f   : > { %1676 = vmatprep.mubr.bf16.mxu1 %v3484_v37  ;;  %3199 = vmatprep.subr.bf16.mxu0 %v3450_v12  ;;  %v2179_v30 = vld [vmem:[#allocation4 + $0xa0] sm:$0xff] }
 0x170   : > { %v1270_v47 = vadd.f32 %v3136_v44, %v3830_v18  ;;  %v1448_v40 = vadd.f32 %v3056_v43, %v1285_v0  ;;  %v1286_v48 = vadd.f32 %v3184_v42, %v3819_v13  ;;  %v1432_v5 = vadd.f32 %v3024_v10, %v1269_v46  ;;  %v3451_v13 = vld [vmem:[%s3590_s16 + $0x38] sm:$0xff]   ;;  %2193 = vperm.xlu0 %3362, %v2159_v16  }
 0x171   : > { %3200 = vmatpush3.bf16.msra.mxu0 %v3451_v13  ;;  %v2161_v18 = vld [vmem:[#allocation4 + $0x10] sm:$0xff] }
 0x172   : > { %v1433_v54 = vadd.f32 %v3025_v32, %v1270_v47  ;;  %v1449_v35 = vadd.f32 %v3057_v3, %v1286_v48  ;;  %2203 = vperm.xlu1 %3363, %v2161_v18   ;;  %v2180_v3 = vld [vmem:[#allocation4 + $0xa8] sm:$0xff]  ;;  %v2181_v44 = vld [vmem:[#allocation4 + $0xb0] sm:$0xff] }
 0x174   : > { %v1457_v59 = vpack.c.bf16 %v1433_v54, %v1432_v5  ;;  %v1465_v61 = vpack.c.bf16 %v1449_v35, %v1448_v40  ;;  %2198 = vperm.xlu0 %3362, %v2160_v27   ;;  %v2182_v5 = vld [vmem:[#allocation4 + $0xb8] sm:$0xff] }
 0x176   : > { %1677 = vmatmul.mubr.bf16.gmra.mrb[60].mxu1 %v1457_v59  ;;  %2208 = vperm.xlu1 %3363, %v2162_v34   ;;  %v2183_v59 = vld [vmem:[#allocation4 + $0xc0] sm:$0xff]  ;;  %v2184_v34 = vld [vmem:[#allocation4 + $0xc8] sm:$0xff] }
 0x177   : > { %1686 = vmatprep.mubr.bf16.mxu1 %v3484_v37 }
 0x17a   : > { %2218 = vperm.xlu1 %3363, %v2164_v24   ;;  %v2185_v24 = vld [vmem:[#allocation4 + $0xd0] sm:$0xff] }
 0x17e   : > { %1687 = vmatmul.mubr.bf16.gmra.mrb[64].mxu1 %v1458_v62  ;;  %v2163_v62 = vld [vmem:[#allocation4 + $0x20] sm:$0xff]  ;;  %2228 = vperm.xlu1 %3363, %v2166_v20  }
 0x17f   : > { %1696 = vmatprep.mubr.bf16.mxu1 %v3484_v37  ;;  %2213 = vperm.xlu0 %3362, %v2163_v62  }
 0x183   : > { %2223 = vperm.xlu0 %3362, %v2165_v39  }
 0x186   : > { %1697 = vmatmul.mubr.bf16.gmra.mrb[68].mxu1 %v1459_v53  ;;  %v1484_v53 = vlaneseq }
 0x187   : > { %1706 = vmatprep.mubr.bf16.mxu1 %v3484_v37  ;;  %2233 = vperm.xlu0 %3362, %v2167_v45  }
 0x18b   : > { %2243 = vperm.xlu0 %3362, %v2169_v9  }
 0x18e   : > { %1707 = vmatmul.mubr.bf16.gmra.mrb[72].mxu1 %v1460_v41  ;;  %v2168_v41 = vld [vmem:[#allocation4 + $0x48] sm:$0xff] }
 0x18f   : > { %1716 = vmatprep.mubr.bf16.mxu1 %v3484_v37  ;;  %2238 = vperm.xlu1 %3363, %v2168_v41   ;;  %v2186_v41 = vld [vmem:[#allocation4 + $0xd8] sm:$0xff] }
 0x190   : > { %2253 = vperm.xlu0 %3362, %v2171_v38   ;;  %v2187_v38 = vld [vmem:[#allocation4 + $0xe0] sm:$0xff] }
 0x196   : > { %1717 = vmatmul.mubr.bf16.gmra.mrb[76].mxu1 %v1461_v52  ;;  %v2170_v52 = vld [vmem:[#allocation4 + $0x58] sm:$0xff] }
 0x197   : > { %1726 = vmatprep.mubr.bf16.mxu1 %v3484_v37  ;;  %2248 = vperm.xlu1 %3363, %v2170_v52  }
 0x19b   : > { %2258 = vperm.xlu1 %3363, %v2172_v33  }
 0x19e   : > { %1727 = vmatmul.mubr.bf16.gmra.mrb[80].mxu1 %v1462_v58 }
 0x19f   : > { %1736 = vmatprep.mubr.bf16.mxu1 %v3484_v37  ;;  %2268 = vperm.xlu1 %3363, %v2174_v57  }
 0x1a3   : > { %2278 = vperm.xlu1 %3363, %v2176_v22  }
 0x1a6   : > { %1737 = vmatmul.mubr.bf16.gmra.mrb[84].mxu1 %v1463_v1  ;;  %v2173_v1 = vld [vmem:[#allocation4 + $0x70] sm:$0xff] }
 0x1a7   : > { %1746 = vmatprep.mubr.bf16.mxu1 %v3484_v37  ;;  %2263 = vperm.xlu0 %3362, %v2173_v1  }
 0x1a8   : > { %2288 = vperm.xlu1 %3363, %v2178_v56  }
 0x1ab   : > { %2273 = vperm.xlu0 %3362, %v2175_v11   ;;  %v2188_v11 = vld [vmem:[#allocation4 + $0xe8] sm:$0xff] }
 0x1ac   : > { %2298 = vperm.xlu1 %3363, %v2180_v3  }
 0x1ae   : > { %1747 = vmatmul.mubr.bf16.gmra.mrb[88].mxu1 %v1464_v36 }
 0x1af   : > { %1756 = vmatprep.mubr.bf16.mxu1 %v3484_v37  ;;  %v1485_v37 = vshrl.u32 %v1484_v53, 7  ;;  %2283 = vperm.xlu0 %3362, %v2177_v51   ;;  %v2190_v51 = vld [vmem:[#allocation4 + $0xf8] sm:$0xff] }
 0x1b0   : > { %2308 = vperm.xlu1 %3363, %v2182_v5  }
 0x1b1   : > { %v4076_v21 = vsub.s32 0, %v1485_v37  ;;  %v1490_v58 = vsub.s32 1, %v1485_v37 }
 0x1b3   : > { %v4080_v28 = vrot.slane %v1482_v60, %v4076_v21  ;;  %v4082_v2 = vrot.slane %v1482_v60, %v1490_v58  ;;  %2293 = vperm.xlu0 %3362, %v2179_v30  }
 0x1b4   : > { %2318 = vperm.xlu1 %3363, %v2184_v34  }
 0x1b6   : > { %1757 = vmatmul.mubr.bf16.gmra.mrb[92].mxu1 %v1465_v61 }
 0x1b7   : > { %2303 = vperm.xlu0 %3362, %v2181_v44  }
 0x1b8   : > { %2328 = vperm.xlu1 %3363, %v2186_v41  }
 0x1bb   : > { %2313 = vperm.xlu0 %3362, %v2183_v59  }
 0x1bc   : > { %2338 = vperm.xlu1 %3363, %v2188_v11  }
 0x1bf   : > { %2323 = vperm.xlu0 %3362, %v2185_v24  }
 0x1c0   : > { %2348 = vperm.xlu1 %3363, %v2190_v51  }
 0x1c3   : > { %2333 = vperm.xlu0 %3362, %v2187_v38  }
 0x211   : > { %v1608_v4 = vpop.f32.mrb[32].mxu1 }
 0x212   : > { %v1609_v14 = vadd.f32 %v1608_v4, %v4080_v28  ;;  %v1610_v15 = vpop.f32.mrb[33].mxu1 }
 0x213   : > { %v1611_v17 = vadd.f32 %v1610_v15, %v4082_v2  ;;  %v1612_v63 = vpop.f32.mrb[34].mxu1  ;;  %v2189_v15 = vld [vmem:[#allocation4 + $0xf0] sm:$0xff] }
 0x214   : > { %v1613_v19 = vadd.f32 %v1612_v63, %v4080_v28  ;;  %v1614_v55 = vpop.f32.mrb[35].mxu1  ;;  %v1767_v23 = vmax.f32 %v1609_v14, 0.0  ;;  %2343 = vperm.xlu0 %3362, %v2189_v15  }
 0x215   : > { %v1615_v49 = vadd.f32 %v1614_v55, %v4082_v2  ;;  %v1768_v8 = vmax.f32 %v1611_v17, 0.0 }
 0x216   : > { %v1769_v25 = vmax.f32 %v1613_v19, 0.0 }
 0x217   : > { %v1770_v26 = vmax.f32 %v1615_v49, 0.0 }
 0x218   : > { %v1831_v43 = vpack.c.bf16 %v1769_v25, %v1767_v23 }
 0x219   : > { %v1832_v6 = vpack.c.bf16 %v1770_v26, %v1768_v8  ;;  %v1618_v29 = vpop.f32.mrb[36].mxu1 }
 0x21a   : > { %v1619_v50 = vadd.f32 %v1618_v29, %v4080_v28  ;;  %v1620_v36 = vpop.f32.mrb[37].mxu1 }
 0x21b   : > { %v1621_v10 = vadd.f32 %v1620_v36, %v4082_v2  ;;  %v1622_v31 = vpop.f32.mrb[38].mxu1  ;;  %2030 = vmatprep.mubr.bf16.mxu0 %v1832_v6 }
 0x21c   : > { %v1623_v32 = vadd.f32 %v1622_v31, %v4080_v28  ;;  %v1624_v7 = vpop.f32.mrb[39].mxu1  ;;  %2031 = vmatmul.mubr.bf16.vlgmr.msra.gmra.mrb[32].mxu0 %v1831_v43  ;;  %v1771_v0 = vmax.f32 %v1619_v50, 0.0 }
 0x21d   : > { %v1625_v46 = vadd.f32 %v1624_v7, %v4082_v2  ;;  %v1772_v47 = vmax.f32 %v1621_v10, 0.0 }
 0x21e   : > { %v1773_v42 = vmax.f32 %v1623_v32, 0.0 }
 0x21f   : > { %v1774_v40 = vmax.f32 %v1625_v46, 0.0 }
 0x220   : > { %v1833_v48 = vpack.c.bf16 %v1773_v42, %v1771_v0 }
 0x221   : > { %v1834_v54 = vpack.c.bf16 %v1774_v40, %v1772_v47  ;;  %v1628_v35 = vpop.f32.mrb[40].mxu1 }
 0x222   : > { %v1629_v61 = vadd.f32 %v1628_v35, %v4080_v28  ;;  %v1630_v12 = vpop.f32.mrb[41].mxu1 }
 0x223   : > { %v1631_v13 = vadd.f32 %v1630_v12, %v4082_v2  ;;  %v1632_v16 = vpop.f32.mrb[42].mxu1  ;;  %2038 = vmatprep.mubr.bf16.mxu0 %v1834_v54 }
 0x224   : > { %v1633_v18 = vadd.f32 %v1632_v16, %v4080_v28  ;;  %v1634_v27 = vpop.f32.mrb[43].mxu1  ;;  %2039 = vmatmul.mubr.bf16.gmra.mrb[36].mxu0 %v1833_v48  ;;  %v1775_v39 = vmax.f32 %v1629_v61, 0.0 }
 0x225   : > { %v1635_v62 = vadd.f32 %v1634_v27, %v4082_v2  ;;  %v1776_v20 = vmax.f32 %v1631_v13, 0.0 }
 0x226   : > { %v1777_v53 = vmax.f32 %v1633_v18, 0.0 }
 0x227   : > { %v1778_v45 = vmax.f32 %v1635_v62, 0.0 }
 0x228   : > { %v1835_v37 = vpack.c.bf16 %v1777_v53, %v1775_v39 }
 0x229   : > { %v1836_v9 = vpack.c.bf16 %v1778_v45, %v1776_v20  ;;  %v1638_v52 = vpop.f32.mrb[44].mxu1 }
 0x22a   : > { %v1639_v60 = vadd.f32 %v1638_v52, %v4080_v28  ;;  %v1640_v58 = vpop.f32.mrb[45].mxu1 }
 0x22b   : > { %v1641_v33 = vadd.f32 %v1640_v58, %v4082_v2  ;;  %v1642_v1 = vpop.f32.mrb[46].mxu1  ;;  %2046 = vmatprep.mubr.bf16.mxu0 %v1836_v9 }
 0x22c   : > { %v1643_v4 = vadd.f32 %v1642_v1, %v4080_v28  ;;  %v1644_v57 = vpop.f32.mrb[47].mxu1  ;;  %2047 = vmatmul.mubr.bf16.gmra.mrb[40].mxu0 %v1835_v37  ;;  %v1779_v17 = vmax.f32 %v1639_v60, 0.0 }
 0x22d   : > { %v1645_v14 = vadd.f32 %v1644_v57, %v4082_v2  ;;  %v1780_v19 = vmax.f32 %v1641_v33, 0.0 }
 0x22e   : > { %v1781_v63 = vmax.f32 %v1643_v4, 0.0 }
 0x22f   : > { %v1782_v55 = vmax.f32 %v1645_v14, 0.0 }
 0x230   : > { %v1837_v22 = vpack.c.bf16 %v1781_v63, %v1779_v17 }
 0x231   : > { %v1838_v49 = vpack.c.bf16 %v1782_v55, %v1780_v19  ;;  %v1648_v23 = vpop.f32.mrb[48].mxu1 }
 0x232   : > { %v1649_v25 = vadd.f32 %v1648_v23, %v4080_v28  ;;  %v1650_v8 = vpop.f32.mrb[49].mxu1 }
 0x233   : > { %v1651_v26 = vadd.f32 %v1650_v8, %v4082_v2  ;;  %v1652_v43 = vpop.f32.mrb[50].mxu1  ;;  %2054 = vmatprep.mubr.bf16.mxu0 %v1838_v49 }
 0x234   : > { %v1653_v56 = vadd.f32 %v1652_v43, %v4080_v28  ;;  %v1654_v6 = vpop.f32.mrb[51].mxu1  ;;  %2055 = vmatmul.mubr.bf16.gmra.mrb[44].mxu0 %v1837_v22  ;;  %v1783_v30 = vmax.f32 %v1649_v25, 0.0 }
 0x235   : > { %v1655_v29 = vadd.f32 %v1654_v6, %v4082_v2  ;;  %v1784_v36 = vmax.f32 %v1651_v26, 0.0 }
 0x236   : > { %v1785_v50 = vmax.f32 %v1653_v56, 0.0 }
 0x237   : > { %v1786_v10 = vmax.f32 %v1655_v29, 0.0 }
 0x238   : > { %v1839_v31 = vpack.c.bf16 %v1785_v50, %v1783_v30 }
 0x239   : > { %v1840_v32 = vpack.c.bf16 %v1786_v10, %v1784_v36  ;;  %v1658_v7 = vpop.f32.mrb[52].mxu1 }
 0x23a   : > { %v1659_v3 = vadd.f32 %v1658_v7, %v4080_v28  ;;  %v1660_v46 = vpop.f32.mrb[53].mxu1 }
 0x23b   : > { %v1661_v44 = vadd.f32 %v1660_v46, %v4082_v2  ;;  %v1662_v0 = vpop.f32.mrb[54].mxu1  ;;  %2062 = vmatprep.mubr.bf16.mxu0 %v1840_v32 }
 0x23c   : > { %v1663_v42 = vadd.f32 %v1662_v0, %v4080_v28  ;;  %v1664_v47 = vpop.f32.mrb[55].mxu1  ;;  %2063 = vmatmul.mubr.bf16.gmra.mrb[48].mxu0 %v1839_v31  ;;  %v1787_v48 = vmax.f32 %v1659_v3, 0.0 }
 0x23d   : > { %v1665_v40 = vadd.f32 %v1664_v47, %v4082_v2  ;;  %v1788_v54 = vmax.f32 %v1661_v44, 0.0 }
 0x23e   : > { %v1789_v5 = vmax.f32 %v1663_v42, 0.0 }
 0x23f   : > { %v1790_v35 = vmax.f32 %v1665_v40, 0.0 }
 0x240   : > { %v1841_v59 = vpack.c.bf16 %v1789_v5, %v1787_v48 }
 0x241   : > { %v1842_v61 = vpack.c.bf16 %v1790_v35, %v1788_v54  ;;  %v1668_v12 = vpop.f32.mrb[56].mxu1 }
 0x242   : > { %v1669_v13 = vadd.f32 %v1668_v12, %v4080_v28  ;;  %v1670_v16 = vpop.f32.mrb[57].mxu1 }
 0x243   : > { %v1671_v18 = vadd.f32 %v1670_v16, %v4082_v2  ;;  %v1672_v27 = vpop.f32.mrb[58].mxu1  ;;  %2070 = vmatprep.mubr.bf16.mxu0 %v1842_v61 }
 0x244   : > { %v1673_v34 = vadd.f32 %v1672_v27, %v4080_v28  ;;  %v1674_v62 = vpop.f32.mrb[59].mxu1  ;;  %2071 = vmatmul.mubr.bf16.gmra.mrb[52].mxu0 %v1841_v59  ;;  %v1791_v39 = vmax.f32 %v1669_v13, 0.0 }
 0x245   : > { %v1675_v24 = vadd.f32 %v1674_v62, %v4082_v2  ;;  %v1792_v20 = vmax.f32 %v1671_v18, 0.0 }
 0x246   : > { %v1793_v53 = vmax.f32 %v1673_v34, 0.0 }
 0x247   : > { %v1794_v45 = vmax.f32 %v1675_v24, 0.0 }
 0x248   : > { %v1843_v37 = vpack.c.bf16 %v1793_v53, %v1791_v39 }
 0x249   : > { %v1844_v41 = vpack.c.bf16 %v1794_v45, %v1792_v20  ;;  %v1678_v9 = vpop.f32.mrb[60].mxu1 }
 0x24a   : > { %v1679_v52 = vadd.f32 %v1678_v9, %v4080_v28  ;;  %v1680_v38 = vpop.f32.mrb[61].mxu1 }
 0x24b   : > { %v1681_v60 = vadd.f32 %v1680_v38, %v4082_v2  ;;  %v1682_v58 = vpop.f32.mrb[62].mxu1  ;;  %2078 = vmatprep.mubr.bf16.mxu0 %v1844_v41 }
 0x24c   : > { %v1683_v33 = vadd.f32 %v1682_v58, %v4080_v28  ;;  %v1684_v1 = vpop.f32.mrb[63].mxu1  ;;  %2079 = vmatmul.mubr.bf16.gmra.mrb[56].mxu0 %v1843_v37  ;;  %v1795_v57 = vmax.f32 %v1679_v52, 0.0 }
 0x24d   : > { %v1685_v4 = vadd.f32 %v1684_v1, %v4082_v2  ;;  %v1796_v14 = vmax.f32 %v1681_v60, 0.0 }
 0x24e   : > { %v1797_v11 = vmax.f32 %v1683_v33, 0.0 }
 0x24f   : > { %v1798_v15 = vmax.f32 %v1685_v4, 0.0 }
 0x250   : > { %v1845_v17 = vpack.c.bf16 %v1797_v11, %v1795_v57 }
 0x251   : > { %v1846_v63 = vpack.c.bf16 %v1798_v15, %v1796_v14  ;;  %v1688_v19 = vpop.f32.mrb[64].mxu1 }
 0x252   : > { %v1689_v55 = vadd.f32 %v1688_v19, %v4080_v28  ;;  %v1690_v22 = vpop.f32.mrb[65].mxu1 }
 0x253   : > { %v1691_v51 = vadd.f32 %v1690_v22, %v4082_v2  ;;  %v1692_v49 = vpop.f32.mrb[66].mxu1  ;;  %2086 = vmatprep.mubr.bf16.mxu0 %v1846_v63 }
 0x254   : > { %v1693_v23 = vadd.f32 %v1692_v49, %v4080_v28  ;;  %v1694_v25 = vpop.f32.mrb[67].mxu1  ;;  %2087 = vmatmul.mubr.bf16.gmra.mrb[60].mxu0 %v1845_v17  ;;  %v1799_v26 = vmax.f32 %v1689_v55, 0.0 }
 0x255   : > { %v1695_v8 = vadd.f32 %v1694_v25, %v4082_v2  ;;  %v1800_v56 = vmax.f32 %v1691_v51, 0.0 }
 0x256   : > { %v1801_v43 = vmax.f32 %v1693_v23, 0.0 }
 0x257   : > { %v1802_v6 = vmax.f32 %v1695_v8, 0.0 }
 0x258   : > { %v1847_v29 = vpack.c.bf16 %v1801_v43, %v1799_v26 }
 0x259   : > { %v1848_v30 = vpack.c.bf16 %v1802_v6, %v1800_v56  ;;  %v1698_v50 = vpop.f32.mrb[68].mxu1 }
 0x25a   : > { %v1699_v36 = vadd.f32 %v1698_v50, %v4080_v28  ;;  %v1700_v10 = vpop.f32.mrb[69].mxu1 }
 0x25b   : > { %v1701_v31 = vadd.f32 %v1700_v10, %v4082_v2  ;;  %v1702_v32 = vpop.f32.mrb[70].mxu1  ;;  %2094 = vmatprep.mubr.bf16.mxu0 %v1848_v30 }
 0x25c   : > { %v1703_v7 = vadd.f32 %v1702_v32, %v4080_v28  ;;  %v1704_v3 = vpop.f32.mrb[71].mxu1  ;;  %2095 = vmatmul.mubr.bf16.gmra.mrb[64].mxu0 %v1847_v29  ;;  %v1803_v44 = vmax.f32 %v1699_v36, 0.0 }
 0x25d   : > { %v1705_v46 = vadd.f32 %v1704_v3, %v4082_v2  ;;  %v1804_v42 = vmax.f32 %v1701_v31, 0.0 }
 0x25e   : > { %v1805_v0 = vmax.f32 %v1703_v7, 0.0 }
 0x25f   : > { %v1806_v47 = vmax.f32 %v1705_v46, 0.0 }
 0x260   : > { %v1849_v40 = vpack.c.bf16 %v1805_v0, %v1803_v44 }
 0x261   : > { %v1850_v48 = vpack.c.bf16 %v1806_v47, %v1804_v42  ;;  %v1708_v5 = vpop.f32.mrb[72].mxu1 }
 0x262   : > { %v1709_v54 = vadd.f32 %v1708_v5, %v4080_v28  ;;  %v1710_v35 = vpop.f32.mrb[73].mxu1 }
 0x263   : > { %v1711_v59 = vadd.f32 %v1710_v35, %v4082_v2  ;;  %v1712_v61 = vpop.f32.mrb[74].mxu1  ;;  %2102 = vmatprep.mubr.bf16.mxu0 %v1850_v48 }
 0x264   : > { %v1713_v12 = vadd.f32 %v1712_v61, %v4080_v28  ;;  %v1714_v13 = vpop.f32.mrb[75].mxu1  ;;  %2103 = vmatmul.mubr.bf16.gmra.mrb[68].mxu0 %v1849_v40  ;;  %v1807_v18 = vmax.f32 %v1709_v54, 0.0 }
 0x265   : > { %v1715_v16 = vadd.f32 %v1714_v13, %v4082_v2  ;;  %v1808_v34 = vmax.f32 %v1711_v59, 0.0 }
 0x266   : > { %v1809_v27 = vmax.f32 %v1713_v12, 0.0 }
 0x267   : > { %v1810_v62 = vmax.f32 %v1715_v16, 0.0 }
 0x268   : > { %v1851_v24 = vpack.c.bf16 %v1809_v27, %v1807_v18 }
 0x269   : > { %v1852_v39 = vpack.c.bf16 %v1810_v62, %v1808_v34  ;;  %v1718_v53 = vpop.f32.mrb[76].mxu1 }
 0x26a   : > { %v1719_v20 = vadd.f32 %v1718_v53, %v4080_v28  ;;  %v1720_v45 = vpop.f32.mrb[77].mxu1 }
 0x26b   : > { %v1721_v37 = vadd.f32 %v1720_v45, %v4082_v2  ;;  %v1722_v41 = vpop.f32.mrb[78].mxu1  ;;  %2110 = vmatprep.mubr.bf16.mxu0 %v1852_v39 }
 0x26c   : > { %v1723_v9 = vadd.f32 %v1722_v41, %v4080_v28  ;;  %v1724_v52 = vpop.f32.mrb[79].mxu1  ;;  %2111 = vmatmul.mubr.bf16.gmra.mrb[72].mxu0 %v1851_v24  ;;  %v1811_v60 = vmax.f32 %v1719_v20, 0.0 }
 0x26d   : > { %v1725_v38 = vadd.f32 %v1724_v52, %v4082_v2  ;;  %v1812_v33 = vmax.f32 %v1721_v37, 0.0 }
 0x26e   : > { %v1813_v58 = vmax.f32 %v1723_v9, 0.0 }
 0x26f   : > { %v1814_v1 = vmax.f32 %v1725_v38, 0.0 }
 0x270   : > { %v1853_v4 = vpack.c.bf16 %v1813_v58, %v1811_v60 }
 0x271   : > { %v1854_v57 = vpack.c.bf16 %v1814_v1, %v1812_v33  ;;  %v1728_v11 = vpop.f32.mrb[80].mxu1 }
 0x272   : > { %v1729_v14 = vadd.f32 %v1728_v11, %v4080_v28  ;;  %v1730_v15 = vpop.f32.mrb[81].mxu1 }
 0x273   : > { %v1731_v17 = vadd.f32 %v1730_v15, %v4082_v2  ;;  %v1732_v63 = vpop.f32.mrb[82].mxu1  ;;  %2118 = vmatprep.mubr.bf16.mxu0 %v1854_v57 }
 0x274   : > { %v1733_v19 = vadd.f32 %v1732_v63, %v4080_v28  ;;  %v1734_v55 = vpop.f32.mrb[83].mxu1  ;;  %2119 = vmatmul.mubr.bf16.gmra.mrb[76].mxu0 %v1853_v4  ;;  %v1815_v51 = vmax.f32 %v1729_v14, 0.0 }
 0x275   : > { %v1735_v22 = vadd.f32 %v1734_v55, %v4082_v2  ;;  %v1816_v23 = vmax.f32 %v1731_v17, 0.0 }
 0x276   : > { %v1817_v49 = vmax.f32 %v1733_v19, 0.0 }
 0x277   : > { %v1818_v25 = vmax.f32 %v1735_v22, 0.0 }
 0x278   : > { %v1855_v8 = vpack.c.bf16 %v1817_v49, %v1815_v51  ;;  %v2194_v49 = vpop.permute.xlu0 %2193 }
 0x279   : > { %v1856_v26 = vpack.c.bf16 %v1818_v25, %v1816_v23  ;;  %v1738_v43 = vpop.f32.mrb[84].mxu1 }
 0x27a   : > { %v1739_v56 = vadd.f32 %v1738_v43, %v4080_v28  ;;  %v1740_v6 = vpop.f32.mrb[85].mxu1 }
 0x27b   : > { %v1741_v29 = vadd.f32 %v1740_v6, %v4082_v2  ;;  %v1742_v30 = vpop.f32.mrb[86].mxu1  ;;  %2126 = vmatprep.mubr.bf16.mxu0 %v1856_v26 }
 0x27c   : > { %v1743_v50 = vadd.f32 %v1742_v30, %v4080_v28  ;;  %v1744_v36 = vpop.f32.mrb[87].mxu1  ;;  %2127 = vmatmul.mubr.bf16.gmra.mrb[80].mxu0 %v1855_v8  ;;  %v1819_v31 = vmax.f32 %v1739_v56, 0.0  ;;  %v4153_v8 = vld [vmem:[%s470_s24] ss:$0 sm:$0xff]  ;;  %v2199_v56 = vpop.permute.xlu0 %2198 }
 0x27d   : > { %v1745_v10 = vadd.f32 %v1744_v36, %v4082_v2  ;;  %v1820_v7 = vmax.f32 %v1741_v29, 0.0 }
 0x27e   : > { %v1821_v32 = vmax.f32 %v1743_v50, 0.0 }
 0x27f   : > { %v1822_v3 = vmax.f32 %v1745_v10, 0.0  ;;  %v2204_v10 = vpop.permute.xlu1 %2203 }
 0x280   : > { %v1857_v46 = vpack.c.bf16 %v1821_v32, %v1819_v31 }
 0x281   : > { %v1858_v44 = vpack.c.bf16 %v1822_v3, %v1820_v7  ;;  %v1748_v0 = vpop.f32.mrb[88].mxu1 }
 0x282   : > { %v1749_v42 = vadd.f32 %v1748_v0, %v4080_v28  ;;  %v1750_v47 = vpop.f32.mrb[89].mxu1 }
 0x283   : > { %v1751_v40 = vadd.f32 %v1750_v47, %v4082_v2  ;;  %v1752_v48 = vpop.f32.mrb[90].mxu1  ;;  %2134 = vmatprep.mubr.bf16.mxu0 %v1858_v44 }
 0x284   : > { %v1753_v5 = vadd.f32 %v1752_v48, %v4080_v28  ;;  %v1754_v54 = vpop.f32.mrb[91].mxu1  ;;  %2135 = vmatmul.mubr.bf16.gmra.mrb[84].mxu0 %v1857_v46  ;;  %v1823_v59 = vmax.f32 %v1749_v42, 0.0  ;;  %v2209_v48 = vpop.permute.xlu1 %2208 }
 0x285   : > { %v1755_v35 = vadd.f32 %v1754_v54, %v4082_v2  ;;  %v1824_v12 = vmax.f32 %v1751_v40, 0.0 }
 0x286   : > { %v1825_v61 = vmax.f32 %v1753_v5, 0.0 }
 0x287   : > { %v1826_v13 = vmax.f32 %v1755_v35, 0.0 }
 0x288   : > { %v1859_v16 = vpack.c.bf16 %v1825_v61, %v1823_v59 }
 0x289   : > { %v1860_v18 = vpack.c.bf16 %v1826_v13, %v1824_v12  ;;  %v1758_v27 = vpop.f32.mrb[92].mxu1 }
 0x28a   : > { %v1759_v34 = vadd.f32 %v1758_v27, %v4080_v28  ;;  %v1760_v62 = vpop.f32.mrb[93].mxu1 }
 0x28b   : > { %v1761_v24 = vadd.f32 %v1760_v62, %v4082_v2  ;;  %v1762_v39 = vpop.f32.mrb[94].mxu1  ;;  %2142 = vmatprep.mubr.bf16.mxu0 %v1860_v18 }
 0x28c   : > { %v1763_v53 = vadd.f32 %v1762_v39, %v4080_v28  ;;  %v1764_v20 = vpop.f32.mrb[95].mxu1  ;;  %2143 = vmatmul.mubr.bf16.gmra.mrb[88].mxu0 %v1859_v16  ;;  %v1827_v37 = vmax.f32 %v1759_v34, 0.0  ;;  %v2214_v16 = vpop.permute.xlu0 %2213 }
 0x28d   : > { %v1765_v45 = vadd.f32 %v1764_v20, %v4082_v2  ;;  %v1828_v9 = vmax.f32 %v1761_v24, 0.0 }
 0x28e   : > { %v1829_v41 = vmax.f32 %v1763_v53, 0.0 }
 0x28f   : > { %v1830_v52 = vmax.f32 %v1765_v45, 0.0 }
 0x290   : > { %v1861_v38 = vpack.c.bf16 %v1829_v41, %v1827_v37  ;;  %v2219_v37 = vpop.permute.xlu1 %2218 }
 0x291   : > { %v1862_v60 = vpack.c.bf16 %v1830_v52, %v1828_v9 }
 0x293   : > { %2150 = vmatprep.mubr.bf16.mxu0 %v1862_v60 }
 0x294   : > { %2151 = vmatmul.mubr.bf16.gmra.mrb[92].mxu0 %v1861_v38  ;;  %v2224_v38 = vpop.permute.xlu0 %2223 }
 0x2ef   : > { %v3201_v58 = vpop.f32.mrb[32].mxu0 }
 0x2f0   : > { %v3202_v33 = vpop.f32.mrb[33].mxu0 }
 0x2f1   : > { %v3203_v1 = vadd.f32 %v3202_v33, %v3201_v58  ;;  %v3204_v4 = vpop.f32.mrb[34].mxu0 }
 0x2f2   : > { %v3205_v57 = vpop.f32.mrb[35].mxu0 }
 0x2f3   : > { %v3206_v11 = vadd.f32 %v3205_v57, %v3204_v4  ;;  %v2033_v29 = vadd.f32 %v3203_v1, %v4153_v8 }
 0x2f5   : > { %v2036_v26 = vadd.f32 %v3206_v11, %v4153_v8  ;;  %v4160_v3 = vmul.f32 %v2194_v49, %v2033_v29 }
 0x2f7   : > { %v3207_v28 = vpop.f32.mrb[36].mxu0  ;;  %v4158_v32 = vmul.f32 %v2199_v56, %v2036_v26  ;;  %v2420_v54 = vmul.f32 %v4160_v3, %v4160_v3 }
 0x2f8   : > { %v3208_v14 = vpop.f32.mrb[37].mxu0 }
 0x2f9   : > { %v3209_v15 = vadd.f32 %v3208_v14, %v3207_v28  ;;  %v3210_v17 = vpop.f32.mrb[38].mxu0  ;;  %v2421_v0 = vmul.f32 %v4158_v32, %v4158_v32  ;;  %v2383_v40 = vadd.f32 %v4158_v32, %v4160_v3 }
 0x2fa   : > { %v3211_v2 = vpop.f32.mrb[39].mxu0 }
 0x2fb   : > { %v3212_v63 = vadd.f32 %v3211_v2, %v3210_v17  ;;  %v2041_v30 = vadd.f32 %v3209_v15, %v4153_v8  ;;  %v2452_v27 = vadd.f32 %v2421_v0, %v2420_v54 }
 0x2fd   : > { %v4162_v46 = vmul.f32 %v2204_v10, %v2041_v30  ;;  %v2044_v44 = vadd.f32 %v3212_v63, %v4153_v8  ;;  %v2229_v63 = vpop.permute.xlu1 %2228 }
 0x2ff   : > { %v3213_v19 = vpop.f32.mrb[40].mxu0  ;;  %v2422_v35 = vmul.f32 %v4162_v46, %v4162_v46  ;;  %v4174_v59 = vmul.f32 %v2209_v48, %v2044_v44  ;;  %v2384_v13 = vadd.f32 %v2383_v40, %v4162_v46 }
 0x300   : > { %v3214_v55 = vpop.f32.mrb[41].mxu0 }
 0x301   : > { %v3215_v22 = vadd.f32 %v3214_v55, %v3213_v19  ;;  %v3216_v51 = vpop.f32.mrb[42].mxu0  ;;  %v2453_v39 = vadd.f32 %v2452_v27, %v2422_v35  ;;  %v2423_v53 = vmul.f32 %v4174_v59, %v4174_v59  ;;  %v2385_v45 = vadd.f32 %v2384_v13, %v4174_v59  ;;  %v2239_v10 = vpop.permute.xlu1 %2238 }
 0x302   : > { %v3217_v23 = vpop.f32.mrb[43].mxu0 }
 0x303   : > { %v3218_v25 = vadd.f32 %v3217_v23, %v3216_v51  ;;  %v2049_v42 = vadd.f32 %v3215_v22, %v4153_v8  ;;  %v2454_v33 = vadd.f32 %v2453_v39, %v2423_v53  ;;  %v2234_v51 = vpop.permute.xlu0 %2233 }
 0x305   : > { %v4177_v34 = vmul.f32 %v2214_v16, %v2049_v42  ;;  %v2052_v62 = vadd.f32 %v3218_v25, %v4153_v8  ;;  %v2249_v16 = vpop.permute.xlu1 %2248 }
 0x307   : > { %v3219_v43 = vpop.f32.mrb[44].mxu0  ;;  %v2424_v41 = vmul.f32 %v4177_v34, %v4177_v34  ;;  %v4186_v9 = vmul.f32 %v2219_v37, %v2052_v62  ;;  %v2386_v60 = vadd.f32 %v2385_v45, %v4177_v34 }
 0x308   : > { %v3220_v6 = vpop.f32.mrb[45].mxu0 }
 0x309   : > { %v3221_v50 = vadd.f32 %v3220_v6, %v3219_v43  ;;  %v3222_v36 = vpop.f32.mrb[46].mxu0  ;;  %v2455_v14 = vadd.f32 %v2454_v33, %v2424_v41  ;;  %v2425_v15 = vmul.f32 %v4186_v9, %v4186_v9  ;;  %v2387_v19 = vadd.f32 %v2386_v60, %v4186_v9 }
 0x30a   : > { %v3223_v31 = vpop.f32.mrb[47].mxu0 }
 0x30b   : > { %v3224_v7 = vadd.f32 %v3223_v31, %v3222_v36  ;;  %v2057_v20 = vadd.f32 %v3221_v50, %v4153_v8  ;;  %v2456_v23 = vadd.f32 %v2455_v14, %v2425_v15 }
 0x30d   : > { %v4189_v1 = vmul.f32 %v2224_v38, %v2057_v20  ;;  %v2060_v4 = vadd.f32 %v3224_v7, %v4153_v8 }
 0x30f   : > { %v3225_v47 = vpop.f32.mrb[48].mxu0  ;;  %v2426_v55 = vmul.f32 %v4189_v1, %v4189_v1  ;;  %v4198_v22 = vmul.f32 %v2229_v63, %v2060_v4  ;;  %v2388_v49 = vadd.f32 %v2387_v19, %v4189_v1 }
 0x310   : > { %v3226_v5 = vpop.f32.mrb[49].mxu0 }
 0x311   : > { %v3227_v61 = vadd.f32 %v3226_v5, %v3225_v47  ;;  %v3228_v12 = vpop.f32.mrb[50].mxu0  ;;  %v2457_v6 = vadd.f32 %v2456_v23, %v2426_v55  ;;  %v2427_v29 = vmul.f32 %v4198_v22, %v4198_v22  ;;  %v2389_v31 = vadd.f32 %v2388_v49, %v4198_v22  ;;  %v2244_v47 = vpop.permute.xlu0 %2243 }
 0x312   : > { %v3229_v18 = vpop.f32.mrb[51].mxu0 }
 0x313   : > { %v3230_v24 = vadd.f32 %v3229_v18, %v3228_v12  ;;  %v2065_v17 = vadd.f32 %v3227_v61, %v4153_v8  ;;  %v2458_v48 = vadd.f32 %v2457_v6, %v2427_v29 }
 0x315   : > { %v4201_v25 = vmul.f32 %v2234_v51, %v2065_v17  ;;  %v2068_v26 = vadd.f32 %v3230_v24, %v4153_v8  ;;  %v2254_v20 = vpop.permute.xlu0 %2253 }
 0x317   : > { %v3231_v52 = vpop.f32.mrb[52].mxu0  ;;  %v2428_v44 = vmul.f32 %v4201_v25, %v4201_v25  ;;  %v4210_v0 = vmul.f32 %v2239_v10, %v2068_v26  ;;  %v2390_v40 = vadd.f32 %v2389_v31, %v4201_v25 }
 0x318   : > { %v3232_v58 = vpop.f32.mrb[53].mxu0 }
 0x319   : > { %v3233_v57 = vadd.f32 %v3232_v58, %v3231_v52  ;;  %v3234_v11 = vpop.f32.mrb[54].mxu0  ;;  %v2459_v35 = vadd.f32 %v2458_v48, %v2428_v44  ;;  %v2429_v61 = vmul.f32 %v4210_v0, %v4210_v0  ;;  %v2391_v18 = vadd.f32 %v2390_v40, %v4210_v0  ;;  %v2264_v17 = vpop.permute.xlu0 %2263 }
 0x31a   : > { %v3235_v28 = vpop.f32.mrb[55].mxu0 }
 0x31b   : > { %v3236_v2 = vadd.f32 %v3235_v28, %v3234_v11  ;;  %v2073_v30 = vadd.f32 %v3233_v57, %v4153_v8  ;;  %v2460_v41 = vadd.f32 %v2459_v35, %v2429_v61  ;;  %v2259_v57 = vpop.permute.xlu1 %2258 }
 0x31d   : > { %v4213_v5 = vmul.f32 %v2244_v47, %v2073_v30  ;;  %v2076_v54 = vadd.f32 %v3236_v2, %v4153_v8  ;;  %v2274_v31 = vpop.permute.xlu0 %2273 }
 0x31f   : > { %v3237_v43 = vpop.f32.mrb[56].mxu0  ;;  %v2430_v62 = vmul.f32 %v4213_v5, %v4213_v5  ;;  %v4222_v24 = vmul.f32 %v2249_v16, %v2076_v54  ;;  %v2392_v45 = vadd.f32 %v2391_v18, %v4213_v5  ;;  %v2269_v30 = vpop.permute.xlu1 %2268 }
 0x320   : > { %v3238_v56 = vpop.f32.mrb[57].mxu0 }
 0x321   : > { %v3239_v50 = vadd.f32 %v3238_v56, %v3237_v43  ;;  %v3240_v36 = vpop.f32.mrb[58].mxu0  ;;  %v2461_v58 = vadd.f32 %v2460_v41, %v2430_v62  ;;  %v2431_v33 = vmul.f32 %v4222_v24, %v4222_v24  ;;  %v2393_v11 = vadd.f32 %v2392_v45, %v4222_v24 }
 0x322   : > { %v3241_v7 = vpop.f32.mrb[59].mxu0 }
 0x323   : > { %v3242_v42 = vadd.f32 %v3241_v7, %v3240_v36  ;;  %v2081_v12 = vadd.f32 %v3239_v50, %v4153_v8  ;;  %v2462_v19 = vadd.f32 %v2461_v58, %v2431_v33 }
 0x325   : > { %v4225_v52 = vmul.f32 %v2254_v20, %v2081_v12  ;;  %v2084_v38 = vadd.f32 %v3242_v42, %v4153_v8  ;;  %v2284_v20 = vpop.permute.xlu0 %2283 }
 0x327   : > { %v3243_v13 = vpop.f32.mrb[60].mxu0  ;;  %v2432_v28 = vmul.f32 %v4225_v52, %v4225_v52  ;;  %v4234_v14 = vmul.f32 %v2259_v57, %v2084_v38  ;;  %v2394_v2 = vadd.f32 %v2393_v11, %v4225_v52 }
 0x328   : > { %v3244_v27 = vpop.f32.mrb[61].mxu0 }
 0x329   : > { %v3245_v39 = vadd.f32 %v3244_v27, %v3243_v13  ;;  %v3246_v53 = vpop.f32.mrb[62].mxu0  ;;  %v2463_v43 = vadd.f32 %v2462_v19, %v2432_v28  ;;  %v2433_v56 = vmul.f32 %v4234_v14, %v4234_v14  ;;  %v2395_v50 = vadd.f32 %v2394_v2, %v4234_v14  ;;  %v2279_v13 = vpop.permute.xlu1 %2278 }
 0x32a   : > { %v3247_v37 = vpop.f32.mrb[63].mxu0 }
 0x32b   : > { %v3248_v60 = vadd.f32 %v3247_v37, %v3246_v53  ;;  %v2089_v4 = vadd.f32 %v3245_v39, %v4153_v8  ;;  %v2464_v44 = vadd.f32 %v2463_v43, %v2433_v56 }
 0x32d   : > { %v4237_v55 = vmul.f32 %v2264_v17, %v2089_v4  ;;  %v2092_v51 = vadd.f32 %v3248_v60, %v4153_v8  ;;  %v2289_v4 = vpop.permute.xlu1 %2288 }
 0x32f   : > { %v3249_v15 = vpop.f32.mrb[64].mxu0  ;;  %v2434_v36 = vmul.f32 %v4237_v55, %v4237_v55  ;;  %v4247_v10 = vmul.f32 %v2269_v30, %v2092_v51  ;;  %v2396_v7 = vadd.f32 %v2395_v50, %v4237_v55 }
 0x330   : > { %v3250_v63 = vpop.f32.mrb[65].mxu0 }
 0x331   : > { %v3251_v49 = vadd.f32 %v3250_v63, %v3249_v15  ;;  %v3252_v23 = vpop.f32.mrb[66].mxu0  ;;  %v2465_v54 = vadd.f32 %v2464_v44, %v2434_v36  ;;  %v2435_v35 = vmul.f32 %v4247_v10, %v4247_v10  ;;  %v2397_v16 = vadd.f32 %v2396_v7, %v4247_v10  ;;  %v2299_v30 = vpop.permute.xlu1 %2298 }
 0x332   : > { %v3253_v26 = vpop.f32.mrb[67].mxu0 }
 0x333   : > { %v2097_v6 = vadd.f32 %v3251_v49, %v4153_v8  ;;  %v3254_v29 = vadd.f32 %v3253_v26, %v3252_v23  ;;  %v2466_v45 = vadd.f32 %v2465_v54, %v2435_v35  ;;  %v2294_v26 = vpop.permute.xlu0 %2293 }
 0x335   : > { %v4250_v42 = vmul.f32 %v2274_v31, %v2097_v6  ;;  %v2100_v47 = vadd.f32 %v3254_v29, %v4153_v8 }
 0x337   : > { %v3255_v40 = vpop.f32.mrb[68].mxu0  ;;  %v2436_v27 = vmul.f32 %v4250_v42, %v4250_v42  ;;  %v4258_v62 = vmul.f32 %v2279_v13, %v2100_v47  ;;  %v2398_v37 = vadd.f32 %v2397_v16, %v4250_v42 }
 0x338   : > { %v3256_v48 = vpop.f32.mrb[69].mxu0 }
 0x339   : > { %v3257_v61 = vadd.f32 %v3256_v48, %v3255_v40  ;;  %v3258_v12 = vpop.f32.mrb[70].mxu0  ;;  %v2467_v60 = vadd.f32 %v2466_v45, %v2436_v27  ;;  %v2437_v58 = vmul.f32 %v4258_v62, %v4258_v62  ;;  %v2399_v11 = vadd.f32 %v2398_v37, %v4258_v62 }
 0x33a   : > { %v3259_v18 = vpop.f32.mrb[71].mxu0 }
 0x33b   : > { %v2105_v39 = vadd.f32 %v3257_v61, %v4153_v8  ;;  %v3260_v53 = vadd.f32 %v3259_v18, %v3258_v12  ;;  %v2468_v19 = vadd.f32 %v2467_v60, %v2437_v58  ;;  %v2304_v18 = vpop.permute.xlu0 %2303 }
 0x33d   : > { %v4262_v41 = vmul.f32 %v2284_v20, %v2105_v39  ;;  %v2108_v38 = vadd.f32 %v3260_v53, %v4153_v8  ;;  %v2309_v20 = vpop.permute.xlu1 %2308 }
 0x33f   : > { %v3261_v33 = vpop.f32.mrb[72].mxu0  ;;  %v2438_v28 = vmul.f32 %v4262_v41, %v4262_v41  ;;  %v4270_v15 = vmul.f32 %v2289_v4, %v2108_v38  ;;  %v2400_v51 = vadd.f32 %v2399_v11, %v4262_v41 }
 0x340   : > { %v3262_v57 = vpop.f32.mrb[73].mxu0 }
 0x341   : > { %v3263_v17 = vadd.f32 %v3262_v57, %v3261_v33  ;;  %v3264_v2 = vpop.f32.mrb[74].mxu0  ;;  %v2469_v43 = vadd.f32 %v2468_v19, %v2438_v28  ;;  %v2439_v56 = vmul.f32 %v4270_v15, %v4270_v15  ;;  %v2401_v50 = vadd.f32 %v2400_v51, %v4270_v15 }
 0x342   : > { %v3265_v63 = vpop.f32.mrb[75].mxu0 }
 0x343   : > { %v2113_v49 = vadd.f32 %v3263_v17, %v4153_v8  ;;  %v3266_v23 = vadd.f32 %v3265_v63, %v3264_v2  ;;  %v2470_v47 = vadd.f32 %v2469_v43, %v2439_v56  ;;  %v2319_v43 = vpop.permute.xlu1 %2318 }
 0x345   : > { %v4276_v6 = vmul.f32 %v2294_v26, %v2113_v49  ;;  %v2116_v29 = vadd.f32 %v3266_v23, %v4153_v8  ;;  %v2314_v49 = vpop.permute.xlu0 %2313 }
 0x347   : > { %v2440_v36 = vmul.f32 %v4276_v6, %v4276_v6  ;;  %v4282_v31 = vmul.f32 %v2299_v30, %v2116_v29  ;;  %v3267_v7 = vpop.f32.mrb[76].mxu0  ;;  %v2402_v40 = vadd.f32 %v2401_v50, %v4276_v6 }
 0x348   : > { %v3268_v44 = vpop.f32.mrb[77].mxu0 }
 0x349   : > { %v3269_v48 = vadd.f32 %v3268_v44, %v3267_v7  ;;  %v3270_v54 = vpop.f32.mrb[78].mxu0  ;;  %v2471_v61 = vadd.f32 %v2470_v47, %v2440_v36  ;;  %v2441_v12 = vmul.f32 %v4282_v31, %v4282_v31  ;;  %v2403_v27 = vadd.f32 %v2402_v40, %v4282_v31 }
 0x34a   : > { %v3271_v35 = vpop.f32.mrb[79].mxu0 }
 0x34b   : > { %v2121_v13 = vadd.f32 %v3269_v48, %v4153_v8  ;;  %v3272_v16 = vadd.f32 %v3271_v35, %v3270_v54  ;;  %v2472_v45 = vadd.f32 %v2471_v61, %v2441_v12 }
 0x34d   : > { %v4289_v39 = vmul.f32 %v2304_v18, %v2121_v13  ;;  %v2124_v53 = vadd.f32 %v3272_v16, %v4153_v8  ;;  %v2324_v13 = vpop.permute.xlu0 %2323 }
 0x34f   : > { %v2404_v37 = vadd.f32 %v2403_v27, %v4289_v39  ;;  %v2442_v38 = vmul.f32 %v4289_v39, %v4289_v39  ;;  %v4295_v60 = vmul.f32 %v2309_v20, %v2124_v53  ;;  %v3273_v58 = vpop.f32.mrb[80].mxu0  ;;  %v2329_v27 = vpop.permute.xlu1 %2328 }
 0x350   : > { %v3274_v33 = vpop.f32.mrb[81].mxu0 }
 0x351   : > { %v2473_v4 = vadd.f32 %v2472_v45, %v2442_v38  ;;  %v2405_v57 = vadd.f32 %v2404_v37, %v4295_v60  ;;  %v2443_v11 = vmul.f32 %v4295_v60, %v4295_v60  ;;  %v3275_v28 = vadd.f32 %v3274_v33, %v3273_v58  ;;  %v3276_v17 = vpop.f32.mrb[82].mxu0 }
 0x352   : > { %v3277_v2 = vpop.f32.mrb[83].mxu0 }
 0x353   : > { %v2474_v63 = vadd.f32 %v2473_v4, %v2443_v11  ;;  %v2129_v19 = vadd.f32 %v3275_v28, %v4153_v8  ;;  %v3278_v51 = vadd.f32 %v3277_v2, %v3276_v17 }
 0x355   : > { %v4301_v23 = vmul.f32 %v2314_v49, %v2129_v19  ;;  %v2132_v26 = vadd.f32 %v3278_v51, %v4153_v8  ;;  %v2334_v19 = vpop.permute.xlu0 %2333 }
 0x357   : > { %v2406_v56 = vadd.f32 %v2405_v57, %v4301_v23  ;;  %v2444_v29 = vmul.f32 %v4301_v23, %v4301_v23  ;;  %v4307_v30 = vmul.f32 %v2319_v43, %v2132_v26  ;;  %v3279_v50 = vpop.f32.mrb[84].mxu0  ;;  %v2339_v26 = vpop.permute.xlu1 %2338 }
 0x358   : > { %v3280_v36 = vpop.f32.mrb[85].mxu0 }
 0x359   : > { %v2475_v7 = vadd.f32 %v2474_v63, %v2444_v29  ;;  %v2407_v44 = vadd.f32 %v2406_v56, %v4307_v30  ;;  %v2445_v47 = vmul.f32 %v4307_v30, %v4307_v30  ;;  %v3281_v40 = vadd.f32 %v3280_v36, %v3279_v50  ;;  %v3282_v48 = vpop.f32.mrb[86].mxu0 }
 0x35a   : > { %v3283_v54 = vpop.f32.mrb[87].mxu0 }
 0x35b   : > { %v2476_v35 = vadd.f32 %v2475_v7, %v2445_v47  ;;  %v2137_v61 = vadd.f32 %v3281_v40, %v4153_v8  ;;  %v3284_v12 = vadd.f32 %v3283_v54, %v3282_v48 }
 0x35d   : > { %v4313_v16 = vmul.f32 %v2324_v13, %v2137_v61  ;;  %v2140_v18 = vadd.f32 %v3284_v12, %v4153_v8  ;;  %v2344_v13 = vpop.permute.xlu0 %2343 }
 0x35f   : > { %v2408_v53 = vadd.f32 %v2407_v44, %v4313_v16  ;;  %v2446_v20 = vmul.f32 %v4313_v16, %v4313_v16  ;;  %v4319_v45 = vmul.f32 %v2329_v27, %v2140_v18  ;;  %v3285_v37 = vpop.f32.mrb[88].mxu0 }
 0x360   : > { %v3286_v38 = vpop.f32.mrb[89].mxu0 }
 0x361   : > { %v2477_v58 = vadd.f32 %v2476_v35, %v2446_v20  ;;  %v2409_v33 = vadd.f32 %v2408_v53, %v4319_v45  ;;  %v2447_v4 = vmul.f32 %v4319_v45, %v4319_v45  ;;  %v3287_v57 = vadd.f32 %v3286_v38, %v3285_v37  ;;  %v3288_v11 = vpop.f32.mrb[90].mxu0  ;;  %v2349_v53 = vpop.permute.xlu1 %2348 }
 0x362   : > { %v3289_v28 = vpop.f32.mrb[91].mxu0 }
 0x363   : > { %v2478_v17 = vadd.f32 %v2477_v58, %v2447_v4  ;;  %v2145_v2 = vadd.f32 %v3287_v57, %v4153_v8  ;;  %v3290_v63 = vadd.f32 %v3289_v28, %v3288_v11 }
 0x365   : > { %v4325_v51 = vmul.f32 %v2334_v19, %v2145_v2  ;;  %v2148_v49 = vadd.f32 %v3290_v63, %v4153_v8 }
 0x367   : > { %v2410_v43 = vadd.f32 %v2409_v33, %v4325_v51  ;;  %v2448_v56 = vmul.f32 %v4325_v51, %v4325_v51  ;;  %v4331_v29 = vmul.f32 %v2339_v26, %v2148_v49  ;;  %v3291_v50 = vpop.f32.mrb[92].mxu0 }
 0x368   : > { %v3292_v36 = vpop.f32.mrb[93].mxu0 }
 0x369   : > { %v2479_v7 = vadd.f32 %v2478_v17, %v2448_v56  ;;  %v2411_v44 = vadd.f32 %v2410_v43, %v4331_v29  ;;  %v2449_v47 = vmul.f32 %v4331_v29, %v4331_v29  ;;  %v3293_v40 = vadd.f32 %v3292_v36, %v3291_v50  ;;  %v3294_v48 = vpop.f32.mrb[94].mxu0 }
 0x36a   : > { %v3295_v54 = vpop.f32.mrb[95].mxu0 }
 0x36b   : > { %v2480_v35 = vadd.f32 %v2479_v7, %v2449_v47  ;;  %v2153_v61 = vadd.f32 %v3293_v40, %v4153_v8  ;;  %v3296_v12 = vadd.f32 %v3295_v54, %v3294_v48  ;;  %v2494_v54 = vld [vmem:[%s473_s27] sm:$0x1] }
 0x36d   : > { %v2381_v18 = vmul.f32 %v2344_v13, %v2153_v61  ;;  %v2156_v27 = vadd.f32 %v3296_v12, %v4153_v8  ;;  %v2498_v12 = vld [vmem:[%s476_s19] sm:$0x1] }
 0x36f   : > { %v2412_v20 = vadd.f32 %v2411_v44, %v2381_v18  ;;  %v2450_v37 = vmul.f32 %v2381_v18, %v2381_v18  ;;  %v2382_v38 = vmul.f32 %v2349_v53, %v2156_v27 }
 0x371   : > { %v2481_v58 = vadd.f32 %v2480_v35, %v2450_v37  ;;  %v2413_v33 = vadd.f32 %v2412_v20, %v2382_v38  ;;  %v2451_v4 = vmul.f32 %v2382_v38, %v2382_v38 }
 0x373   : > { %v2414_v57 = vrot.slane %v2413_v33, 4  ;;  %v2482_v11 = vadd.f32 %v2481_v58, %v2451_v4 }
 0x375   : > { %v2415_v28 = vadd.f32 %v2414_v57, %v2413_v33  ;;  %v2483_v17 = vrot.slane %v2482_v11, 4 }
 0x377   : > { %v2416_v2 = vrot.slane %v2415_v28, 2  ;;  %v2484_v63 = vadd.f32 %v2483_v17, %v2482_v11 }
 0x379   : > { %v2417_v19 = vadd.f32 %v2416_v2, %v2415_v28  ;;  %v2485_v49 = vrot.slane %v2484_v63, 2 }
 0x37b   : > { %v2418_v26 = vrot.slane %v2417_v19, 1  ;;  %v2486_v43 = vadd.f32 %v2485_v49, %v2484_v63 }
 0x37d   : > { %v2419_v8 = vadd.f32 %v2418_v26, %v2417_v19  ;;  %v2487_v56 = vrot.slane %v2486_v43, 1 }
 0x37f   : > { %v2488_v50 = vadd.f32 %v2487_v56, %v2486_v43  ;;  %v2489_v36 = vmul.f32 0.0625, %v2419_v8 }
 0x381   : > { %v2490_v7 = vmul.f32 0.0625, %v2488_v50  ;;  %v2491_v44 = vmul.f32 %v2489_v36, %v2489_v36 }
 0x383   : > { %v2492_v47 = vsub.f32 %v2490_v7, %v2491_v44 }
 0x385   : > { %v2493_v40 = vmax.f32 %v2492_v47, 0.0 }
 0x387   : > { %v2495_v48 = vadd.f32 1e-05, %v2493_v40 }
 0x389   : > { %3452 = vrsqrt.f32 %v2495_v48 }
 0x393   : > { %v3453_v35 = vpop.eup %3452 }
 0x394   : > { %v2497_v61 = vmul.f32 %v3453_v35, %v2494_v54 }
 0x396   : > { %v2499_v13 = vmul.f32 %v2497_v61, %v2489_v36  ;;  %v2505_v27 = vrot.slane %v2497_v61, %v4076_v21 }
 0x398   : > { %v2500_v53 = vsub.f32 %v2498_v12, %v2499_v13  ;;  %v2507_v20 = vmul.f32 %v2505_v27, %v4160_v3  ;;  %v2508_v37 = vmul.f32 %v2505_v27, %v4158_v32  ;;  %v2509_v58 = vmul.f32 %v2505_v27, %v4162_v46 }
 0x399   : > { %v2510_v33 = vmul.f32 %v2505_v27, %v4174_v59  ;;  %v2511_v4 = vmul.f32 %v2505_v27, %v4177_v34  ;;  %v2512_v57 = vmul.f32 %v2505_v27, %v4186_v9  ;;  %v2513_v11 = vmul.f32 %v2505_v27, %v4189_v1 }
 0x39a   : > { %v2514_v28 = vmul.f32 %v2505_v27, %v4198_v22  ;;  %v2515_v17 = vmul.f32 %v2505_v27, %v4201_v25  ;;  %v2516_v2 = vmul.f32 %v2505_v27, %v4210_v0  ;;  %v2517_v3 = vmul.f32 %v2505_v27, %v4213_v5 }
 0x39b   : > { %v2518_v32 = vmul.f32 %v2505_v27, %v4222_v24  ;;  %v2519_v46 = vmul.f32 %v2505_v27, %v4225_v52  ;;  %v2520_v59 = vmul.f32 %v2505_v27, %v4234_v14  ;;  %v2521_v34 = vmul.f32 %v2505_v27, %v4237_v55 }
 0x39c   : > { %v2522_v9 = vmul.f32 %v2505_v27, %v4247_v10  ;;  %v2529_v1 = vmul.f32 %v2505_v27, %v4289_v39  ;;  %v2530_v22 = vmul.f32 %v2505_v27, %v4295_v60  ;;  %v2531_v25 = vmul.f32 %v2505_v27, %v4301_v23 }
 0x39d   : > { %v2532_v0 = vmul.f32 %v2505_v27, %v4307_v30  ;;  %v2533_v5 = vmul.f32 %v2505_v27, %v4313_v16  ;;  %v2534_v24 = vmul.f32 %v2505_v27, %v4319_v45  ;;  %v2535_v52 = vmul.f32 %v2505_v27, %v4325_v51 }
 0x39e   : > { %v2536_v14 = vmul.f32 %v2505_v27, %v4331_v29  ;;  %v2537_v63 = vmul.f32 %v2505_v27, %v2381_v18  ;;  %v2523_v55 = vmul.f32 %v2505_v27, %v4250_v42  ;;  %v2524_v10 = vmul.f32 %v2505_v27, %v4258_v62 }
 0x39f   : > { %v2538_v39 = vmul.f32 %v2505_v27, %v2382_v38  ;;  %v2543_v60 = vrot.slane %v2500_v53, %v4076_v21  ;;  %v2525_v23 = vmul.f32 %v2505_v27, %v4262_v41  ;;  %v2526_v30 = vmul.f32 %v2505_v27, %v4270_v15 }
 0x3a0   : > { %v2527_v16 = vmul.f32 %v2505_v27, %v4276_v6  ;;  %v2528_v45 = vmul.f32 %v2505_v27, %v4282_v31 }
 0x3a1   : > { %v2545_v19 = vadd.f32 %v2543_v60, %v2507_v20  ;;  %v2546_v51 = vadd.f32 %v2543_v60, %v2508_v37  ;;  %v2547_v49 = vadd.f32 %v2543_v60, %v2509_v58  ;;  %v2548_v29 = vadd.f32 %v2543_v60, %v2510_v33 }
 0x3a2   : > { %v2549_v18 = vadd.f32 %v2543_v60, %v2511_v4  ;;  %v2550_v26 = vadd.f32 %v2543_v60, %v2512_v57  ;;  %v2551_v42 = vadd.f32 %v2543_v60, %v2513_v11  ;;  %v2552_v43 = vadd.f32 %v2543_v60, %v2514_v28 }
 0x3a3   : > { %v2553_v62 = vadd.f32 %v2543_v60, %v2515_v17  ;;  %v2554_v38 = vadd.f32 %v2543_v60, %v2516_v2  ;;  %v2555_v8 = vadd.f32 %v2543_v60, %v2517_v3  ;;  %v2556_v21 = vadd.f32 %v2543_v60, %v2518_v32 }
 0x3a4   : > { %v2557_v56 = vadd.f32 %v2543_v60, %v2519_v46  ;;  %v2558_v41 = vadd.f32 %v2543_v60, %v2520_v59  ;;  %v2559_v50 = vadd.f32 %v2543_v60, %v2521_v34  ;;  %v2560_v15 = vadd.f32 %v2543_v60, %v2522_v9 }
 0x3a5   : > { %v2561_v36 = vadd.f32 %v2543_v60, %v2523_v55  ;;  %v2562_v6 = vadd.f32 %v2543_v60, %v2524_v10  ;;  %v2563_v7 = vadd.f32 %v2543_v60, %v2525_v23  ;;  %v2564_v31 = vadd.f32 %v2543_v60, %v2526_v30 }
 0x3a6   : > { %v4380_v44 = vadd.f32 %v2543_v60, %v2527_v16  ;;  %v4382_v47 = vadd.f32 %v2543_v60, %v2528_v45  ;;  %v4384_v40 = vadd.f32 %v2543_v60, %v2529_v1  ;;  %v4386_v48 = vadd.f32 %v2543_v60, %v2530_v22 }
 0x3a7   : > { %v4388_v54 = vadd.f32 %v2543_v60, %v2531_v25  ;;  %v4390_v35 = vadd.f32 %v2543_v60, %v2532_v0  ;;  %v4392_v61 = vadd.f32 %v2543_v60, %v2533_v5  ;;  %v4394_v12 = vadd.f32 %v2543_v60, %v2534_v24 }
 0x3a8   : > { %v4396_v13 = vadd.f32 %v2543_v60, %v2535_v52  ;;  %v4398_v27 = vadd.f32 %v2543_v60, %v2536_v14  ;;  %v4400_v53 = vadd.f32 %v2543_v60, %v2537_v63  ;;  %v4402_v20 = vadd.f32 %v2543_v60, %v2538_v39 }
 0x3a9   : > { %v2577_v37 = vmax.f32 %v2545_v19, 0.0  ;;  %v2578_v58 = vmax.f32 %v2546_v51, 0.0  ;;  %v2579_v33 = vmax.f32 %v2547_v49, 0.0  ;;  %v2580_v4 = vmax.f32 %v2548_v29, 0.0 }
 0x3aa   : > { %v2581_v57 = vmax.f32 %v2549_v18, 0.0  ;;  %v2582_v11 = vmax.f32 %v2550_v26, 0.0  ;;  %v2583_v28 = vmax.f32 %v2551_v42, 0.0  ;;  %v2584_v17 = vmax.f32 %v2552_v43, 0.0 }
 0x3ab   : > { %v2585_v2 = vmax.f32 %v2553_v62, 0.0  ;;  %v2586_v3 = vmax.f32 %v2554_v38, 0.0  ;;  %v2587_v32 = vmax.f32 %v2555_v8, 0.0  ;;  %v2588_v46 = vmax.f32 %v2556_v21, 0.0  ;;  %2609 = vst [vmem:[#allocation2] sm:$0xff] %v2577_v37  ;;  %2610 = vst [vmem:[#allocation2 + $0x8] sm:$0xff] %v2578_v58 }
 0x3ac   : > { %2611 = vst [vmem:[#allocation2 + $0x10] sm:$0xff] %v2579_v33  ;;  %2612 = vst [vmem:[#allocation2 + $0x18] sm:$0xff] %v2580_v4  ;;  %v2589_v59 = vmax.f32 %v2557_v56, 0.0  ;;  %v2590_v34 = vmax.f32 %v2558_v41, 0.0  ;;  %v2591_v9 = vmax.f32 %v2559_v50, 0.0  ;;  %v2592_v1 = vmax.f32 %v2560_v15, 0.0 }
 0x3ad   : > { %2613 = vst [vmem:[#allocation2 + $0x20] sm:$0xff] %v2581_v57  ;;  %2614 = vst [vmem:[#allocation2 + $0x28] sm:$0xff] %v2582_v11  ;;  %v2593_v22 = vmax.f32 %v2561_v36, 0.0  ;;  %v2594_v25 = vmax.f32 %v2562_v6, 0.0  ;;  %v2595_v0 = vmax.f32 %v2563_v7, 0.0  ;;  %v2596_v5 = vmax.f32 %v2564_v31, 0.0 }
 0x3ae   : > { %2615 = vst [vmem:[#allocation2 + $0x30] sm:$0xff] %v2583_v28  ;;  %2616 = vst [vmem:[#allocation2 + $0x38] sm:$0xff] %v2584_v17  ;;  %v2597_v24 = vmax.f32 %v4380_v44, 0.0  ;;  %v2598_v52 = vmax.f32 %v4382_v47, 0.0  ;;  %v2599_v14 = vmax.f32 %v4384_v40, 0.0  ;;  %v2600_v63 = vmax.f32 %v4386_v48, 0.0 }
 0x3af   : > { %2617 = vst [vmem:[#allocation2 + $0x40] sm:$0xff] %v2585_v2  ;;  %2618 = vst [vmem:[#allocation2 + $0x48] sm:$0xff] %v2586_v3  ;;  %v2601_v55 = vmax.f32 %v4388_v54, 0.0  ;;  %v2602_v10 = vmax.f32 %v4390_v35, 0.0  ;;  %v2603_v39 = vmax.f32 %v4392_v61, 0.0  ;;  %v2604_v60 = vmax.f32 %v4394_v12, 0.0 }
 0x3b0   : > { %2619 = vst [vmem:[#allocation2 + $0x50] sm:$0xff] %v2587_v32  ;;  %2620 = vst [vmem:[#allocation2 + $0x58] sm:$0xff] %v2588_v46  ;;  %v2605_v23 = vmax.f32 %v4396_v13, 0.0  ;;  %v2606_v30 = vmax.f32 %v4398_v27, 0.0  ;;  %v2607_v16 = vmax.f32 %v4400_v53, 0.0  ;;  %v2608_v45 = vmax.f32 %v4402_v20, 0.0 }
 0x3b1   : > { %2621 = vst [vmem:[#allocation2 + $0x60] sm:$0xff] %v2589_v59  ;;  %2622 = vst [vmem:[#allocation2 + $0x68] sm:$0xff] %v2590_v34  ;;  %v2710_v17 = vld [vmem:[%s4538_s9] sm:$0xff] (%p2641_p6) }
 0x3b2   : > { %2623 = vst [vmem:[#allocation2 + $0x70] sm:$0xff] %v2591_v9  ;;  %2624 = vst [vmem:[#allocation2 + $0x78] sm:$0xff] %v2592_v1  ;;  %v2646_v49 = vld [vmem:[#allocation2] sm:$0xff] (%p2641_p6)  ;;  %v2647_v18 = vld [vmem:[#allocation2 + $0x8] sm:$0xff] (%p2641_p6)  ;;  %v2986_v2 = vcombine.high (%p2641_p6), %v2710_v17, %v2710_v17 }
 0x3b3   : > { %2625 = vst [vmem:[#allocation2 + $0x80] sm:$0xff] %v2593_v22  ;;  %2626 = vst [vmem:[#allocation2 + $0x88] sm:$0xff] %v2594_v25  ;;  %v2711_v43 = vpack.c.bf16 (%p2641_p6), %v2647_v18, %v2646_v49  ;;  %v2648_v38 = vld [vmem:[#allocation2 + $0x10] sm:$0xff] (%p2641_p6)  ;;  %v2649_v8 = vld [vmem:[#allocation2 + $0x18] sm:$0xff] (%p2641_p6) }
 0x3b4   : > { %2627 = vst [vmem:[#allocation2 + $0x90] sm:$0xff] %v2595_v0  ;;  %2628 = vst [vmem:[#allocation2 + $0x98] sm:$0xff] %v2596_v5  ;;  %2645 = sbr.rel (!%p2641_p6) target bundleno = 1205 (0x4b5), region = 107  ;;  %v2650_v41 = vld [vmem:[#allocation2 + $0x20] sm:$0xff] (%p2641_p6)  ;;  %v2651_v50 = vld [vmem:[#allocation2 + $0x28] sm:$0xff] (%p2641_p6)  ;;  %v2712_v15 = vpack.c.bf16 (%p2641_p6), %v2649_v8, %v2648_v38  ;;  %2766 = vmatprep.mubr.bf16.mxu0 (%p2641_p6), %v2986_v2  ;;  %v2985_v0 = vcombine.low (%p2641_p6), %v2710_v17, %v2710_v17 }
 0x3b5   : > { %2629 = vst [vmem:[#allocation2 + $0xa0] sm:$0xff] %v2597_v24  ;;  %2630 = vst [vmem:[#allocation2 + $0xa8] sm:$0xff] %v2598_v52  ;;  %v2652_v7 = vld [vmem:[#allocation2 + $0x30] sm:$0xff] (%p2641_p6)  ;;  %v2653_v44 = vld [vmem:[#allocation2 + $0x38] sm:$0xff] (%p2641_p6)  ;;  %v2713_v27 = vpack.c.bf16 (%p2641_p6), %v2651_v50, %v2650_v41 }
 0x3b6   : > { %2631 = vst [vmem:[#allocation2 + $0xb0] sm:$0xff] %v2599_v14  ;;  %2632 = vst [vmem:[#allocation2 + $0xb8] sm:$0xff] %v2600_v63  ;;  %v2654_v48 = vld [vmem:[#allocation2 + $0x40] sm:$0xff] (%p2641_p6)  ;;  %v2655_v54 = vld [vmem:[#allocation2 + $0x48] sm:$0xff] (%p2641_p6)  ;;  %v2714_v3 = vpack.c.bf16 (%p2641_p6), %v2653_v44, %v2652_v7 }
 0x3b7   : > { %2633 = vst [vmem:[#allocation2 + $0xc0] sm:$0xff] %v2601_v55  ;;  %2634 = vst [vmem:[#allocation2 + $0xc8] sm:$0xff] %v2602_v10  ;;  %v2656_v12 = vld [vmem:[#allocation2 + $0x50] sm:$0xff] (%p2641_p6)  ;;  %v2657_v13 = vld [vmem:[#allocation2 + $0x58] sm:$0xff] (%p2641_p6)  ;;  %v2715_v46 = vpack.c.bf16 (%p2641_p6), %v2655_v54, %v2654_v48 }
 0x3b8   : > { %2635 = vst [vmem:[#allocation2 + $0xd0] sm:$0xff] %v2603_v39  ;;  %2636 = vst [vmem:[#allocation2 + $0xd8] sm:$0xff] %v2604_v60  ;;  %v2658_v37 = vld [vmem:[#allocation2 + $0x60] sm:$0xff] (%p2641_p6)  ;;  %v2659_v33 = vld [vmem:[#allocation2 + $0x68] sm:$0xff] (%p2641_p6)  ;;  %v2716_v34 = vpack.c.bf16 (%p2641_p6), %v2657_v13, %v2656_v12 }
 0x3b9   : > { %2637 = vst [vmem:[#allocation2 + $0xe0] sm:$0xff] %v2605_v23  ;;  %2638 = vst [vmem:[#allocation2 + $0xe8] sm:$0xff] %v2606_v30  ;;  %v2660_v11 = vld [vmem:[#allocation2 + $0x70] sm:$0xff] (%p2641_p6)  ;;  %v2661_v28 = vld [vmem:[#allocation2 + $0x78] sm:$0xff] (%p2641_p6)  ;;  %v2717_v1 = vpack.c.bf16 (%p2641_p6), %v2659_v33, %v2658_v37 }
 0x3ba   : > { %2639 = vst [vmem:[#allocation2 + $0xf0] sm:$0xff] %v2607_v16  ;;  %2640 = vst [vmem:[#allocation2 + $0xf8] sm:$0xff] %v2608_v45  ;;  %v2662_v19 = vld [vmem:[#allocation2 + $0x80] sm:$0xff] (%p2641_p6)  ;;  %v2663_v51 = vld [vmem:[#allocation2 + $0x88] sm:$0xff] (%p2641_p6)  ;;  %v2718_v25 = vpack.c.bf16 (%p2641_p6), %v2661_v28, %v2660_v11 }
 0x3bb   : > { %2694 = vst [vmem:[%s4539_s10 + $0x80] sm:$0xff] %v2662_v19  ;;  %2695 = vst [vmem:[%s4539_s10 + $0x88] sm:$0xff] %v2663_v51  ;;  %v2719_v29 = vpack.c.bf16 %v2663_v51, %v2662_v19  ;;  %v2664_v26 = vld [vmem:[#allocation2 + $0x90] sm:$0xff]  ;;  %v2665_v42 = vld [vmem:[#allocation2 + $0x98] sm:$0xff] }
 0x3bc   : > { %2678 = vst [vmem:[%s4539_s10] sm:$0xff] %v2646_v49  ;;  %2679 = vst [vmem:[%s4539_s10 + $0x8] sm:$0xff] %v2647_v18  ;;  %v2720_v62 = vpack.c.bf16 %v2665_v42, %v2664_v26  ;;  %v2666_v21 = vld [vmem:[#allocation2 + $0xa0] sm:$0xff]  ;;  %v2667_v56 = vld [vmem:[#allocation2 + $0xa8] sm:$0xff] }
 0x3bd   : > { %2696 = vst [vmem:[%s4539_s10 + $0x90] sm:$0xff] %v2664_v26  ;;  %2697 = vst [vmem:[%s4539_s10 + $0x98] sm:$0xff] %v2665_v42  ;;  %3297 = vmatprep.subr.bf16.mxu0 %v2719_v29  ;;  %v2668_v36 = vld [vmem:[#allocation2 + $0xb0] sm:$0xff]  ;;  %v2669_v6 = vld [vmem:[#allocation2 + $0xb8] sm:$0xff]  ;;  %v2721_v31 = vpack.c.bf16 %v2667_v56, %v2666_v21 }
 0x3be   : > { %2680 = vst [vmem:[%s4539_s10 + $0x10] sm:$0xff] %v2648_v38  ;;  %2681 = vst [vmem:[%s4539_s10 + $0x18] sm:$0xff] %v2649_v8  ;;  %3298 = vmatpush3.bf16.msra.mxu0 %v2711_v43  ;;  %v2670_v47 = vld [vmem:[#allocation2 + $0xc0] sm:$0xff]  ;;  %v2671_v40 = vld [vmem:[#allocation2 + $0xc8] sm:$0xff]  ;;  %v2722_v58 = vpack.c.bf16 %v2669_v6, %v2668_v36 }
 0x3bf   : > { %2698 = vst [vmem:[%s4539_s10 + $0xa0] sm:$0xff] %v2666_v21  ;;  %2699 = vst [vmem:[%s4539_s10 + $0xa8] sm:$0xff] %v2667_v56  ;;  %3299 = vmatprep.subr.bf16.mxu0 %v2720_v62  ;;  %v2672_v35 = vld [vmem:[#allocation2 + $0xd0] sm:$0xff]  ;;  %v2673_v61 = vld [vmem:[#allocation2 + $0xd8] sm:$0xff]  ;;  %v2723_v32 = vpack.c.bf16 %v2671_v40, %v2670_v47 }
 0x3c0   : > { %2682 = vst [vmem:[%s4539_s10 + $0x20] sm:$0xff] %v2650_v41  ;;  %2683 = vst [vmem:[%s4539_s10 + $0x28] sm:$0xff] %v2651_v50  ;;  %v2674_v53 = vld [vmem:[#allocation2 + $0xe0] sm:$0xff]  ;;  %v2675_v20 = vld [vmem:[#allocation2 + $0xe8] sm:$0xff]  ;;  %v2724_v59 = vpack.c.bf16 %v2673_v61, %v2672_v35 }
 0x3c1   : > { %2700 = vst [vmem:[%s4539_s10 + $0xb0] sm:$0xff] %v2668_v36  ;;  %2701 = vst [vmem:[%s4539_s10 + $0xb8] sm:$0xff] %v2669_v6  ;;  %v2676_v4 = vld [vmem:[#allocation2 + $0xf0] sm:$0xff]  ;;  %v2677_v57 = vld [vmem:[#allocation2 + $0xf8] sm:$0xff]  ;;  %v2725_v9 = vpack.c.bf16 %v2675_v20, %v2674_v53 }
 0x3c2   : > { %2684 = vst [vmem:[%s4539_s10 + $0x30] sm:$0xff] %v2652_v7  ;;  %2685 = vst [vmem:[%s4539_s10 + $0x38] sm:$0xff] %v2653_v44  ;;  %3300 = vmatpush3.bf16.msra.mxu0 %v2712_v15  ;;  %v2726_v22 = vpack.c.bf16 %v2677_v57, %v2676_v4 }
 0x3c3   : > { %2702 = vst [vmem:[%s4539_s10 + $0xc0] sm:$0xff] %v2670_v47  ;;  %2703 = vst [vmem:[%s4539_s10 + $0xc8] sm:$0xff] %v2671_v40  ;;  %3301 = vmatprep.subr.bf16.mxu0 %v2721_v31 }
 0x3c4   : > { %2686 = vst [vmem:[%s4539_s10 + $0x40] sm:$0xff] %v2654_v48  ;;  %2687 = vst [vmem:[%s4539_s10 + $0x48] sm:$0xff] %v2655_v54 }
 0x3c5   : > { %2704 = vst [vmem:[%s4539_s10 + $0xd0] sm:$0xff] %v2672_v35  ;;  %2705 = vst [vmem:[%s4539_s10 + $0xd8] sm:$0xff] %v2673_v61 }
 0x3c6   : > { %2688 = vst [vmem:[%s4539_s10 + $0x50] sm:$0xff] %v2656_v12  ;;  %2689 = vst [vmem:[%s4539_s10 + $0x58] sm:$0xff] %v2657_v13  ;;  %3302 = vmatpush3.bf16.msra.mxu0 %v2713_v27 }
 0x3c7   : > { %2706 = vst [vmem:[%s4539_s10 + $0xe0] sm:$0xff] %v2674_v53  ;;  %2707 = vst [vmem:[%s4539_s10 + $0xe8] sm:$0xff] %v2675_v20  ;;  %3303 = vmatprep.subr.bf16.mxu0 %v2722_v58 }
 0x3c8   : > { %2690 = vst [vmem:[%s4539_s10 + $0x60] sm:$0xff] %v2658_v37  ;;  %2691 = vst [vmem:[%s4539_s10 + $0x68] sm:$0xff] %v2659_v33 }
 0x3c9   : > { %2708 = vst [vmem:[%s4539_s10 + $0xf0] sm:$0xff] %v2676_v4  ;;  %2709 = vst [vmem:[%s4539_s10 + $0xf8] sm:$0xff] %v2677_v57 }
 0x3ca   : > { %2692 = vst [vmem:[%s4539_s10 + $0x70] sm:$0xff] %v2660_v11  ;;  %2693 = vst [vmem:[%s4539_s10 + $0x78] sm:$0xff] %v2661_v28  ;;  %3304 = vmatpush3.bf16.msra.mxu0 %v2714_v3 }
 0x3cb   : > { %3305 = vmatprep.subr.bf16.mxu0 %v2723_v32 }
 0x3ce   : > { %3306 = vmatpush3.bf16.msra.mxu0 %v2715_v46 }
 0x3cf   : > { %3307 = vmatprep.subr.bf16.mxu0 %v2724_v59 }
 0x3d2   : > { %3308 = vmatpush3.bf16.msra.mxu0 %v2716_v34 }
 0x3d3   : > { %3309 = vmatprep.subr.bf16.mxu0 %v2725_v9 }
 0x3d6   : > { %3310 = vmatpush3.bf16.msra.mxu0 %v2717_v1 }
 0x3d7   : > { %3311 = vmatprep.subr.bf16.mxu0 %v2726_v22 }
 0x3da   : > { %3312 = vmatpush3.bf16.msra.mxu0 %v2718_v25 }
 0x3dd   : > { %2767 = vmatmul.mubr.bf16.vlgmr.msra.gmra.mrb[0].mxu0 %v2985_v0 }
 0x4b0   : > { %v3313_v5 = vpop.f32.mrb[0].mxu0 }
 0x4b1   : > { %v3314_v24 = vpop.f32.mrb[1].mxu0 }
 0x4b2   : > { %v3315_v52 = vadd.f32 %v3314_v24, %v3313_v5  ;;  %v3316_v14 = vpop.f32.mrb[2].mxu0 }
 0x4b3   : > { %v3317_v63 = vpop.f32.mrb[3].mxu0 }
 0x4b4   : > { %2774 = vst [vmem:[%s4540_s11] sm:$0xff] %v3315_v52 }
 0x4b5 PF: > { %s4550_s28 = sld [smem:[#allocation9_spill]]  ;;  %s4551_s17 = sld [smem:[#allocation8_spill]] }
 0x4b6   : > { %s4552_s18 = sld [smem:[#allocation10_spill]] }
 0x4bb   : > { %s22_s19 = sadd.s32 1, %s4550_s28  }
 0x4bc   : > { %p19_p7 = scmp.ge.s32.totalorder %s22_s19, 7  }
 0x4be   :  { %21 = sbr.rel (!%p19_p7) target bundleno = 3 (0x3), region = 171 }

</bundles_post_ra>
